<compile_context>
chip_gen: v7x
topology: tpu7x:2x2x1
jax: 0.10.0
libtpu: 0.0.40
codegen_flags: <defaults>
</compile_context>

<pallas_src>
import math
import functools

import jax
import jax.numpy as jnp
from jax.experimental import pallas as pl
from jax.experimental.pallas import tpu as pltpu


# --------------------------------------------------------------------------
# kernels
# --------------------------------------------------------------------------
def _conv_stats_kernel(scale_ref, shift_ref, src_ref, halo_ref, w_ref, b_ref,
                       y_ref, part_ref, *, H, K, dil, neg_slope):
    """One (batch, time-tile) step:
       z = LeakyReLU(src * scale + shift)         # fused prev-GroupNorm + act
       y = W @ im2col(z)  + b                     # single MXU matmul, bf16 in / f32 acc
       emit y tile and per-channel (sum, sum_sq) partials for this tile."""
    C, TT = src_ref.shape

    scale = scale_ref[...]                       # (C, 1) f32
    shift = shift_ref[...]                       # (C, 1) f32

    def pre_act(v):                              # prev GN (folded) + LeakyReLU, f32
        z = v * scale + shift
        return jnp.where(z >= 0.0, z, neg_slope * z)

    z_mid = pre_act(src_ref[...])                # (C, TT)

    halos = halo_ref[...]                        # (C, 2H) f32
    t = pl.program_id(1)
    # out-of-range halos behave like the conv's zero padding (applied AFTER act)
    z_l = jnp.where(t == 0, 0.0, pre_act(halos[:, :H]))
    z_r = jnp.where(t == pl.num_programs(1) - 1, 0.0, pre_act(halos[:, H:]))

    # im2col slab built once per tile -> one matmul with contraction K*C
    z_ext = jnp.concatenate([z_l, z_mid, z_r], axis=1)            # (C, TT+2H)
    taps = [z_ext[:, k * dil: k * dil + TT] for k in range(K)]
    im2col = jnp.concatenate(taps, axis=0).astype(jnp.bfloat16)   # (K*C, TT)

    y = jnp.dot(w_ref[...], im2col,
                preferred_element_type=jnp.float32)               # (C, TT) f32
    y = y + b_ref[...]                                            # conv bias
    y_ref[...] = y

    # one-pass stats: per-channel partial sum / sum-of-squares over this tile
    s = jnp.sum(y, axis=1, keepdims=True)                         # (C, 1)
    ss = jnp.sum(y * y, axis=1, keepdims=True)                    # (C, 1)
    part_ref[...] = jnp.concatenate([s, ss], axis=1)              # (C, 2)


def _finalize_kernel(scale_ref, shift_ref, y_ref, x_ref, out_ref, *, res_scale):
    """out = (GN_last(y) + x) * sqrt(0.5), GN folded into per-(b,c) scale/shift."""
    z = y_ref[...] * scale_ref[...] + shift_ref[...]
    out_ref[...] = (z + x_ref[...]) * res_scale


# --------------------------------------------------------------------------
# pallas_call wrappers
# --------------------------------------------------------------------------
def _conv_stats_call(src, halos, scale, shift, w2, b, *, K, dil, neg_slope, TT):
    B, C, T = src.shape
    nT = T // TT
    H = (K - 1) // 2 * dil

    kern = functools.partial(_conv_stats_kernel, H=H, K=K, dil=dil,
                             neg_slope=neg_slope)
    cost = pl.CostEstimate(flops=2 * B * C * (K * C) * T,
                           transcendentals=0,
                           bytes_accessed=2 * 4 * B * C * T + 2 * C * K * C)

    y, part = pl.pallas_call(
        kern,
        out_shape=(
            jax.ShapeDtypeStruct((B, C, T), jnp.float32),
            jax.ShapeDtypeStruct((B, nT, C, 2), jnp.float32),
        ),
        grid_spec=pltpu.PrefetchScalarGridSpec(
            num_scalar_prefetch=0,
            grid=(B, nT),
            in_specs=[
                pl.BlockSpec((None, C, 1), lambda b, t: (b, 0, 0)),       # scale
                pl.BlockSpec((None, C, 1), lambda b, t: (b, 0, 0)),       # shift
                pl.BlockSpec((None, C, TT), lambda b, t: (b, 0, t)),      # src tile
                pl.BlockSpec((None, None, C, 2 * H),
                             lambda b, t: (b, t, 0, 0)),                  # halos
                pl.BlockSpec((C, K * C), lambda b, t: (0, 0)),            # weights (bf16)
                pl.BlockSpec((C, 1), lambda b, t: (0, 0)),                # bias
            ],
            out_specs=[
                pl.BlockSpec((None, C, TT), lambda b, t: (b, 0, t)),      # y tile
                pl.BlockSpec((None, None, C, 2), lambda b, t: (b, t, 0, 0)),  # partial stats
            ],
        ),
        compiler_params=pltpu.CompilerParams(
            # no cross-iteration state -> both axes parallel (v7x megacore)
            dimension_semantics=("parallel", "parallel"),
            # re-derive tile size / limit per generation; 48 MiB fits v7x's 64 MiB VMEM
            vmem_limit_bytes=48 * 1024 * 1024),
        cost_estimate=cost,
    )(scale, shift, src, halos, w2, b)
    return y, part


def _finalize_call(scale, shift, y, x, TT):
    B, C, T = x.shape
    nT = T // TT
    kern = functools.partial(_finalize_kernel, res_scale=math.sqrt(0.5))
    return pl.pallas_call(
        kern,
        out_shape=jax.ShapeDtypeStruct((B, C, T), jnp.float32),
        grid_spec=pltpu.PrefetchScalarGridSpec(
            num_scalar_prefetch=0,
            grid=(B, nT),
            in_specs=[
                pl.BlockSpec((None, C, 1), lambda b, t: (b, 0, 0)),
                pl.BlockSpec((None, C, 1), lambda b, t: (b, 0, 0)),
                pl.BlockSpec((None, C, TT), lambda b, t: (b, 0, t)),
                pl.BlockSpec((None, C, TT), lambda b, t: (b, 0, t)),
            ],
            out_specs=pl.BlockSpec((None, C, TT), lambda b, t: (b, 0, t)),
        ),
        compiler_params=pltpu.CompilerParams(
            dimension_semantics=("parallel", "parallel"),
            vmem_limit_bytes=48 * 1024 * 1024),
    )(scale, shift, y, x)


# --------------------------------------------------------------------------
# glue helpers (tiny per-batch / boundary-column work only)
# --------------------------------------------------------------------------
def _halos(src, nT, TT, H):
    """(B, nT, C, 2H): for each tile, the H columns just left / right of it."""
    B, C, _ = src.shape
    sr = src.reshape(B, C, nT, TT)
    lefts = sr[:, :, :, TT - H:]                       # last H cols of each tile
    rights = sr[:, :, :, :H]                           # first H cols of each tile
    zeros = jnp.zeros((B, C, 1, H), src.dtype)
    left_h = jnp.concatenate([zeros, lefts[:, :, :-1, :]], axis=2)
    right_h = jnp.concatenate([rights[:, :, 1:, :], zeros], axis=2)
    h = jnp.concatenate([left_h, right_h], axis=3)     # (B, C, nT, 2H)
    return jnp.transpose(h, (0, 2, 1, 3))              # (B, nT, C, 2H)


def _fold_groupnorm(part, gamma, beta, n, eps):
    """Reduce per-tile channel partials -> per-(batch,channel) scale/shift so
    GroupNorm(num_groups=1) + affine becomes y*scale + shift (tiny (B,C) op)."""
    s = jnp.sum(part[..., 0], axis=(1, 2))             # (B,)
    ss = jnp.sum(part[..., 1], axis=(1, 2))            # (B,)
    mean = s / n
    var = jnp.maximum(ss / n - mean * mean, 0.0)
    rstd = jax.lax.rsqrt(var + eps)
    scale = rstd[:, None] * gamma[None, :]                       # (B, C)
    shift = beta[None, :] - mean[:, None] * scale                # (B, C)
    return scale[..., None].astype(jnp.float32), shift[..., None].astype(jnp.float32)


def conv1d_layernorm_lrelu_residual(x, params, *, kernel_size=3, dilation=1,
                                    layers=2, nin_layers=0, leaky_relu=True,
                                    dropout=0.0, use_causal_conv=False,
                                    eps=1e-5, time_tile=None):
    """x: (B, C, T) f32 -> (B, C, T) f32.  params: w{l} (C,C,K), b{l}, gamma{l}, beta{l}."""
    if use_causal_conv:
        raise NotImplementedError("TODO(synk): causal padding path")
    if nin_layers != 0:
        raise NotImplementedError("TODO(synk): nin_layers > 0")
    assert (kernel_size - 1) % 2 == 0, "Not support even number kernel size."
    del dropout  # eval-mode identity (module default p=0.0)

    B, C, T = x.shape
    K = kernel_size
    neg = 0.2 if leaky_relu else 0.0

    if time_tile is None:
        TT = T
        for cand in (1024, 512, 256, 128):   # biggest tile with safe VMEM budget
            if T % cand == 0:
                TT = cand
                break
    else:
        TT = time_tile
    assert T % TT == 0, "time_tile must divide T"
    nT = T // TT
    n_elems = C * T

    x = x.astype(jnp.float32)
    h = x
    # layer 0 pre-norm is the identity (just LeakyReLU on raw input)
    scale = jnp.ones((B, C, 1), jnp.float32)
    shift = jnp.zeros((B, C, 1), jnp.float32)

    for l in range(layers):
        dil = dilation if l == 0 else 1
        H = (K - 1) // 2 * dil
        assert 1 <= H <= TT, "halo width must fit inside one time tile"
        # (C, C, K) -> (C, K*C) matching the im2col row layout; bf16 for the MXU
        w2 = jnp.transpose(params[f"w{l}"], (0, 2, 1)).reshape(C, K * C)
        w2 = w2.astype(jnp.bfloat16)
        b = params[f"b{l}"].reshape(C, 1).astype(jnp.float32)
        halos = _halos(h, nT, TT, H)
        h, part = _conv_stats_call(h, halos, scale, shift, w2, b,
                                   K=K, dil=dil, neg_slope=neg, TT=TT)
        scale, shift = _fold_groupnorm(part, params[f"gamma{l}"],
                                       params[f"beta{l}"], n_elems, eps)

    return _finalize_call(scale, shift, h, x, TT)


# --------------------------------------------------------------------------
# pure-JAX reference (mirrors the PyTorch forward; convs use bf16 operands with
# f32 accumulation to match the kernel's MXU precision)
# --------------------------------------------------------------------------
def _ref_forward(x, params, *, kernel_size=3, dilation=1, layers=2,
                 leaky_relu=True, eps=1e-5):
    neg = 0.2 if leaky_relu else 0.0
    h = x.astype(jnp.float32)
    for l in range(layers):
        dil = dilation if l == 0 else 1
        pad = (kernel_size - 1) // 2 * dil
        z = jnp.where(h >= 0, h, neg * h)
        y = jax.lax.conv_general_dilated(
            z.astype(jnp.bfloat16), params[f"w{l}"].astype(jnp.bfloat16),
            window_strides=(1,), padding=[(pad, pad)], rhs_dilation=(dil,),
            dimension_numbers=("NCH", "OIH", "NCH"),
            preferred_element_type=jnp.float32,
        ) + params[f"b{l}"][None, :, None]
        mu = y.mean(axis=(1, 2), keepdims=True)
        var = y.var(axis=(1, 2), keepdims=True)
        h = (y - mu) * jax.lax.rsqrt(var + eps)
        h = h * params[f"gamma{l}"][None, :, None] + params[f"beta{l}"][None, :, None]
    return (h + x) * math.sqrt(0.5)


# --------------------------------------------------------------------------
if __name__ == "__main__":
    B, C, T, K, LAYERS = 2, 128, 256, 3, 2   # module default channels=128

    key = jax.random.PRNGKey(0)
    ks = jax.random.split(key, 4 * LAYERS + 1)
    params = {}
    for l in range(LAYERS):
        k0, k1, k2, k3 = ks[4 * l: 4 * l + 4]
        params[f"w{l}"] = 0.08 * jax.random.normal(k0, (C, C, K), jnp.float32)
        params[f"b{l}"] = 0.05 * jax.random.normal(k1, (C,), jnp.float32)
        params[f"gamma{l}"] = 1.0 + 0.05 * jax.random.normal(k2, (C,), jnp.float32)
        params[f"beta{l}"] = 0.05 * jax.random.normal(k3, (C,), jnp.float32)
    x = jax.random.normal(ks[-1], (B, C, T), jnp.float32)

    # time_tile=128 -> 2 time tiles, exercising the halo + two-pass GroupNorm path
    out = conv1d_layernorm_lrelu_residual(
        x, params, kernel_size=K, dilation=1, layers=LAYERS, time_tile=128)
    out = jax.block_until_ready(out)

    ref = _ref_forward(x, params, kernel_size=K, dilation=1, layers=LAYERS)
    assert out.shape == (B, C, T)
    max_err = float(jnp.max(jnp.abs(out - ref)))
    assert jnp.allclose(out, ref, atol=1e-2, rtol=1e-2), f"max_err={max_err}"

    print("KERNEL_OK")
</pallas_src>

<mosaic_0001>
module attributes {stable_mosaic.version = 11 : i64} {
  func.func @_conv_stats_kernel(%arg0: i32, %arg1: i32, %arg2: memref<1x128x1xf32, #tpu.memory_space<vmem>>, %arg3: memref<1x128x1xf32, #tpu.memory_space<vmem>>, %arg4: memref<1x128x128xf32, #tpu.memory_space<vmem>>, %arg5: memref<1x1x128x2xf32, #tpu.memory_space<vmem>>, %arg6: memref<128x384xbf16, #tpu.memory_space<vmem>>, %arg7: memref<128x1xf32, #tpu.memory_space<vmem>>, %arg8: memref<1x128x128xf32, #tpu.memory_space<vmem>>, %arg9: memref<1x1x128x2xf32, #tpu.memory_space<vmem>>) attributes {dimension_semantics = [#tpu.dimension_semantics<parallel>, #tpu.dimension_semantics<parallel>], iteration_bounds = array<i64: 2, 2>, scalar_prefetch = 0 : i64, scratch_operands = 0 : i64, tpu.core_type = #tpu.core_type<tc>, window_params = [{transform_indices = @transform_0, window_bounds = array<i64: 1, 128, 1>}, {transform_indices = @transform_1, window_bounds = array<i64: 1, 128, 1>}, {transform_indices = @transform_2, window_bounds = array<i64: 1, 128, 128>}, {transform_indices = @transform_3, window_bounds = array<i64: 1, 1, 128, 2>}, {pipeline_mode = #tpu.pipeline_mode<synchronous>, transform_indices = @transform_4, window_bounds = array<i64: 128, 384>}, {pipeline_mode = #tpu.pipeline_mode<synchronous>, transform_indices = @transform_5, window_bounds = array<i64: 128, 1>}, {transform_indices = @transform_6, window_bounds = array<i64: 1, 128, 128>}, {transform_indices = @transform_7, window_bounds = array<i64: 1, 1, 128, 2>}]} {
    %c0 = arith.constant 0 : index
    %c0_0 = arith.constant 0 : index
    %c0_1 = arith.constant 0 : index
    %0 = vector.load %arg2[%c0, %c0_0, %c0_1] : memref<1x128x1xf32, #tpu.memory_space<vmem>>, vector<1x128x1xf32>
    %1 = vector.shape_cast %0 : vector<1x128x1xf32> to vector<128x1xf32>
    %c0_2 = arith.constant 0 : index
    %c0_3 = arith.constant 0 : index
    %c0_4 = arith.constant 0 : index
    %2 = vector.load %arg3[%c0_2, %c0_3, %c0_4] : memref<1x128x1xf32, #tpu.memory_space<vmem>>, vector<1x128x1xf32>
    %3 = vector.shape_cast %2 : vector<1x128x1xf32> to vector<128x1xf32>
    %c0_5 = arith.constant 0 : index
    %c0_6 = arith.constant 0 : index
    %c0_7 = arith.constant 0 : index
    %4 = vector.load %arg4[%c0_5, %c0_6, %c0_7] : memref<1x128x128xf32, #tpu.memory_space<vmem>>, vector<1x128x128xf32>
    %5 = vector.shape_cast %4 : vector<1x128x128xf32> to vector<128x128xf32>
    %6 = vector.broadcast %1 : vector<128x1xf32> to vector<128x128xf32>
    %7 = arith.mulf %5, %6 : vector<128x128xf32>
    %8 = vector.broadcast %3 : vector<128x1xf32> to vector<128x128xf32>
    %9 = arith.addf %7, %8 : vector<128x128xf32>
    %cst = arith.constant 0.000000e+00 : f32
    %10 = vector.broadcast %cst : f32 to vector<128x128xf32>
    %11 = arith.cmpf oge, %9, %10 : vector<128x128xf32>
    %cst_8 = arith.constant 2.000000e-01 : f32
    %12 = vector.broadcast %cst_8 : f32 to vector<128x128xf32>
    %13 = arith.mulf %12, %9 : vector<128x128xf32>
    %14 = arith.select %11, %9, %13 : vector<128x128xi1>, vector<128x128xf32>
    %c0_9 = arith.constant 0 : index
    %c0_10 = arith.constant 0 : index
    %c0_11 = arith.constant 0 : index
    %c0_12 = arith.constant 0 : index
    %15 = vector.load %arg5[%c0_9, %c0_10, %c0_11, %c0_12] : memref<1x1x128x2xf32, #tpu.memory_space<vmem>>, vector<1x1x128x2xf32>
    %16 = vector.shape_cast %15 : vector<1x1x128x2xf32> to vector<128x2xf32>
    %c0_i32 = arith.constant 0 : i32
    %17 = arith.cmpi eq, %arg1, %c0_i32 : i32
    %18 = vector.extract_strided_slice %16 {offsets = [0, 0], sizes = [128, 1], strides = [1, 1]} : vector<128x2xf32> to vector<128x1xf32>
    %19 = arith.mulf %18, %1 : vector<128x1xf32>
    %20 = arith.addf %19, %3 : vector<128x1xf32>
    %cst_13 = arith.constant 0.000000e+00 : f32
    %21 = vector.broadcast %cst_13 : f32 to vector<128x1xf32>
    %22 = arith.cmpf oge, %20, %21 : vector<128x1xf32>
    %cst_14 = arith.constant 2.000000e-01 : f32
    %23 = vector.broadcast %cst_14 : f32 to vector<128x1xf32>
    %24 = arith.mulf %23, %20 : vector<128x1xf32>
    %25 = arith.select %22, %20, %24 : vector<128x1xi1>, vector<128x1xf32>
    %cst_15 = arith.constant 0.000000e+00 : f32
    %26 = vector.broadcast %cst_15 : f32 to vector<128x1xf32>
    %27 = arith.select %17, %26, %25 : vector<128x1xf32>
    %c1_i32 = arith.constant 1 : i32
    %28 = arith.cmpi eq, %arg1, %c1_i32 : i32
    %29 = vector.extract_strided_slice %16 {offsets = [0, 1], sizes = [128, 1], strides = [1, 1]} : vector<128x2xf32> to vector<128x1xf32>
    %30 = arith.mulf %29, %1 : vector<128x1xf32>
    %31 = arith.addf %30, %3 : vector<128x1xf32>
    %cst_16 = arith.constant 0.000000e+00 : f32
    %32 = vector.broadcast %cst_16 : f32 to vector<128x1xf32>
    %33 = arith.cmpf oge, %31, %32 : vector<128x1xf32>
    %cst_17 = arith.constant 2.000000e-01 : f32
    %34 = vector.broadcast %cst_17 : f32 to vector<128x1xf32>
    %35 = arith.mulf %34, %31 : vector<128x1xf32>
    %36 = arith.select %33, %31, %35 : vector<128x1xi1>, vector<128x1xf32>
    %cst_18 = arith.constant 0.000000e+00 : f32
    %37 = vector.broadcast %cst_18 : f32 to vector<128x1xf32>
    %38 = arith.select %28, %37, %36 : vector<128x1xf32>
    %39 = tpu.concatenate %27, %14, %38 in 1 : vector<128x1xf32>, vector<128x128xf32>, vector<128x1xf32> -> vector<128x130xf32>
    %40 = vector.extract_strided_slice %39 {offsets = [0, 0], sizes = [128, 128], strides = [1, 1]} : vector<128x130xf32> to vector<128x128xf32>
    %41 = vector.extract_strided_slice %39 {offsets = [0, 1], sizes = [128, 128], strides = [1, 1]} : vector<128x130xf32> to vector<128x128xf32>
    %42 = vector.extract_strided_slice %39 {offsets = [0, 2], sizes = [128, 128], strides = [1, 1]} : vector<128x130xf32> to vector<128x128xf32>
    %43 = tpu.concatenate %40, %41, %42 in 0 : vector<128x128xf32>, vector<128x128xf32>, vector<128x128xf32> -> vector<384x128xf32>
    %44 = arith.truncf %43 : vector<384x128xf32> to vector<384x128xbf16>
    %c0_19 = arith.constant 0 : index
    %c0_20 = arith.constant 0 : index
    %45 = vector.load %arg6[%c0_19, %c0_20] : memref<128x384xbf16, #tpu.memory_space<vmem>>, vector<128x384xbf16>
    %cst_21 = arith.constant dense<0.000000e+00> : vector<128x128xf32>
    %46 = tpu.matmul %45, %44, %cst_21 {dimension_numbers = #tpu.dot_dimension_numbers<[1], [0], [0], [1], [0, 0, 1, 1], [], []>} : vector<128x384xbf16>, vector<384x128xbf16>, vector<128x128xf32> -> vector<128x128xf32>
    %c0_22 = arith.constant 0 : index
    %c0_23 = arith.constant 0 : index
    %47 = vector.load %arg7[%c0_22, %c0_23] : memref<128x1xf32, #tpu.memory_space<vmem>>, vector<128x1xf32>
    %48 = vector.broadcast %47 : vector<128x1xf32> to vector<128x128xf32>
    %49 = arith.addf %46, %48 : vector<128x128xf32>
    %c0_24 = arith.constant 0 : index
    %c0_25 = arith.constant 0 : index
    %c0_26 = arith.constant 0 : index
    %50 = vector.load %arg8[%c0_24, %c0_25, %c0_26] : memref<1x128x128xf32, #tpu.memory_space<vmem>>, vector<1x128x128xf32>
    %51 = vector.shape_cast %50 : vector<1x128x128xf32> to vector<128x128xf32>
    %52 = vector.shape_cast %49 : vector<128x128xf32> to vector<1x128x128xf32>
    tpu.vector_store %arg8[%c0_24, %c0_25, %c0_26], %52 {strides = array<i32>} : memref<1x128x128xf32, #tpu.memory_space<vmem>>, vector<1x128x128xf32>,
    %cst_27 = arith.constant dense<0.000000e+00> : vector<128xf32>
    %53 = vector.multi_reduction <add>, %49, %cst_27 [1] : vector<128x128xf32> to vector<128xf32>
    %54 = vector.shape_cast %53 : vector<128xf32> to vector<128x1xf32>
    %55 = arith.mulf %49, %49 : vector<128x128xf32>
    %cst_28 = arith.constant dense<0.000000e+00> : vector<128xf32>
    %56 = vector.multi_reduction <add>, %55, %cst_28 [1] : vector<128x128xf32> to vector<128xf32>
    %57 = vector.shape_cast %56 : vector<128xf32> to vector<128x1xf32>
    %58 = tpu.concatenate %54, %57 in 1 : vector<128x1xf32>, vector<128x1xf32> -> vector<128x2xf32>
    %c0_29 = arith.constant 0 : index
    %c0_30 = arith.constant 0 : index
    %c0_31 = arith.constant 0 : index
    %c0_32 = arith.constant 0 : index
    %59 = vector.load %arg9[%c0_29, %c0_30, %c0_31, %c0_32] : memref<1x1x128x2xf32, #tpu.memory_space<vmem>>, vector<1x1x128x2xf32>
    %60 = vector.shape_cast %59 : vector<1x1x128x2xf32> to vector<128x2xf32>
    %61 = vector.shape_cast %58 : vector<128x2xf32> to vector<1x1x128x2xf32>
    tpu.vector_store %arg9[%c0_29, %c0_30, %c0_31, %c0_32], %61 {strides = array<i32>} : memref<1x1x128x2xf32, #tpu.memory_space<vmem>>, vector<1x1x128x2xf32>,
    return
  }
  func.func @transform_0(%arg0: i32, %arg1: i32) -> (i32, i32, i32) {
    %c0_i32 = arith.constant 0 : i32
    %c0_i32_0 = arith.constant 0 : i32
    %c0_i32_1 = arith.constant 0 : i32
    return %arg0, %c0_i32, %c0_i32_0 : i32, i32, i32
  }
  func.func @transform_1(%arg0: i32, %arg1: i32) -> (i32, i32, i32) {
    %c0_i32 = arith.constant 0 : i32
    %c0_i32_0 = arith.constant 0 : i32
    %c0_i32_1 = arith.constant 0 : i32
    return %arg0, %c0_i32, %c0_i32_0 : i32, i32, i32
  }
  func.func @transform_2(%arg0: i32, %arg1: i32) -> (i32, i32, i32) {
    %c0_i32 = arith.constant 0 : i32
    %c0_i32_0 = arith.constant 0 : i32
    return %arg0, %c0_i32, %arg1 : i32, i32, i32
  }
  func.func @transform_3(%arg0: i32, %arg1: i32) -> (i32, i32, i32, i32) {
    %c0_i32 = arith.constant 0 : i32
    %c0_i32_0 = arith.constant 0 : i32
    %c0_i32_1 = arith.constant 0 : i32
    return %arg0, %arg1, %c0_i32, %c0_i32_0 : i32, i32, i32, i32
  }
  func.func @transform_4(%arg0: i32, %arg1: i32) -> (i32, i32) {
    %c0_i32 = arith.constant 0 : i32
    %c0_i32_0 = arith.constant 0 : i32
    %c0_i32_1 = arith.constant 0 : i32
    return %c0_i32, %c0_i32_0 : i32, i32
  }
  func.func @transform_5(%arg0: i32, %arg1: i32) -> (i32, i32) {
    %c0_i32 = arith.constant 0 : i32
    %c0_i32_0 = arith.constant 0 : i32
    %c0_i32_1 = arith.constant 0 : i32
    return %c0_i32, %c0_i32_0 : i32, i32
  }
  func.func @transform_6(%arg0: i32, %arg1: i32) -> (i32, i32, i32) {
    %c0_i32 = arith.constant 0 : i32
    %c0_i32_0 = arith.constant 0 : i32
    return %arg0, %c0_i32, %arg1 : i32, i32, i32
  }
  func.func @transform_7(%arg0: i32, %arg1: i32) -> (i32, i32, i32, i32) {
    %c0_i32 = arith.constant 0 : i32
    %c0_i32_0 = arith.constant 0 : i32
    %c0_i32_1 = arith.constant 0 : i32
    return %arg0, %arg1, %c0_i32, %c0_i32_0 : i32, i32, i32, i32
  }
}

</mosaic_0001>

<bundles_post_ra>
// kernel: tpu_custom_call.1
= control target key start
LH: loop header
LB: loop body
LE: loop exit
PB: predicated region body
PF: predicated region fallthrough
CT: control target
= control target key end

     0   :  { %s3922_s0 = inlined_call_operand.vmem [shape: f32[2,128,1], index: 0, kind: input, shape index: {}]   ;;  %s3923_s1 = inlined_call_operand.vmem [shape: f32[2,128,1], index: 1, kind: input, shape index: {}]   ;;  %s3924_s2 = inlined_call_operand.vmem [shape: f32[2,128,256], index: 2, kind: input, shape index: {}]   ;;  %s3925_s3 = inlined_call_operand.vmem [shape: f32[2,2,128,2], index: 3, kind: input, shape index: {}]   ;;  %s3926_s4 = inlined_call_operand.vmem [shape: bf16[128,384], index: 4, kind: input, shape index: {}]   ;;  %s3927_s5 = inlined_call_operand.vmem [shape: f32[128,1], index: 5, kind: input, shape index: {}]   ;;  %s3928_s6 = inlined_call_operand.hbm [shape: f32[2,128,256], index: 6, kind: output, shape index: {0}]   ;;  %s3929_s7 = inlined_call_operand.vmem [shape: f32[2,2,128,2], index: 7, kind: output, shape index: {1}]  }
   0x1   :  { %3937 = sst [smem:[#allocation11_spill]] %s3922_s0 }
   0x2   :  { %13 = vsyncpa [#allocation4], 0 }
   0x3   :  { %15 = vsyncpa [#allocation4 + $0x1], 0  ;;  %s2828_s24 = smov 0   ;;  %s2830_s25 = smov 0  }
   0x4   :  { %s2832_s26 = smov 0   ;;  %s2834_s27 = smov 0  }
   0x5   :  { %s2836_s28 = smov 0   ;;  %s2838_s29 = smov 0  }
   0x6   :  { %s2840_s30 = smov 0   ;;  %s2842_s8 = smov 0  }
   0x7 LB: > { %s2209_s9 = sadd.s32 4294967295, %s2778_s8   ;;  %s2210_s10 = sadd.s32 4294967294, %s2778_s8   ;;  %s2778_s8 = sphi %s2842_s8, %s21_s8   ;;  %s2774_s30 = sphi %s2840_s30, %s3964_s30   ;;  %s2770_s29 = sphi %s2838_s29, %s3963_s29   ;;  %s2766_s28 = sphi %s2836_s28, %s3962_s28   ;;  %s2762_s27 = sphi %s2834_s27, %s3961_s27   ;;  %s2758_s26 = sphi %s2832_s26, %s3960_s26   ;;  %s2754_s25 = sphi %s2830_s25, %s3959_s25   ;;  %s2750_s24 = sphi %s2828_s24, %s3958_s24  }
   0x8   : > { %s30_s11 = sadd.s32 1, %s2770_s29  ;;  %s33_s12 = sadd.s32 1, %s2774_s30 }
   0x9   : > { %p31_p0 = scmp.ge.s32.totalorder %s30_s11, 2  ;;  %p101_p1 = scmp.ne.s32.totalorder %s2758_s26, %s2754_s25 }
   0xa   : > { %p102_p2 = scmp.eq.s32.totalorder %s2778_s8, 0  ;;  %p203_p5 = scmp.eq.s32.totalorder %s2209_s9, 3 }
   0xb   : > { %s3966_s11 = smov (%p31_p0, %s30_s11), 0  ;;  %s3968_s12 = smov (!%p31_p0, %s33_s12), %s2774_s30 }
   0xc   : > { %s90_s13 = ssub.s32 %s2770_s29, %s3966_s11  ;;  %p2880_p3 = por %p102_p2, %p101_p1 }
   0xd   : > { %p35_p4 = scmp.ge.s32.totalorder %s3968_s12, 2  ;;  %p208_p6 = scmp.ne.s32.totalorder %s2754_s25, %s2750_s24 }
   0xe   : > { %p209_p7 = scmp.eq.s32.totalorder %s2210_s10, 3  ;;  %p2888_p8 = por %p203_p5, %p101_p1 }
   0xf   : > { %s3970_s12 = smov (%p35_p4, %s3968_s12), 0  ;;  %s94_s19 = sadd.s32 1, %s2758_s26 }
  0x10   : > { %3939 = sst [smem:[#allocation6_spill]] %s3970_s12  ;;  %p2892_p9 = por %p209_p7, %p208_p6 }
  0x11   : > { %s89_s17 = ssub.s32 %s2774_s30, %s3970_s12  ;;  %p2212_p11 = scmp.ge.s32.totalorder %s2778_s8, 4 }
  0x12   : > { %s91_s18 = sor.u32 %s90_s13, %s89_s17 }
  0x13   : > { %p92_p10 = scmp.eq.s32.totalorder %s91_s18, 0  ;;  %259 = sbr.rel (%p2212_p11) target bundleno = 40 (0x28), region = 24 }
  0x15   : > { %s2900_s20 = scalar_select %p92_p10, %s2758_s26, %s94_s19  }
  0x1a   : > { %278 = sbr.rel (!%p2880_p3) target bundleno = 40 (0x28), region = 36  ;;  %s280_s21 = sand.u32 (%p2880_p3), 1, %s2758_s26  }
  0x1b   : > { %s2214_s22 = sshll.u32 (%p2880_p3), %s2774_s30, 5  ;;  %s2213_s23 = sshll.u32 (%p2880_p3), %s280_s21, 7 }
  0x1c   : > { %s284_s9 = sadd.s32 (%p2880_p3), %s2770_s29, %s2214_s22  ;;  %s282_s14 = scalar_lea.vmem (%p2880_p3), [#allocation2], %s2213_s23 }
  0x1d   : > { %s2215_s10 = sshll.u32 (%p2880_p3), %s284_s9, 3 }
  0x1e   : > { %s2911_s17 = scalar_lea.vmem (%p2880_p3), %s3924_s2, %s2215_s10 }
  0x1f   : > { %v344_v0 = vld [vmem:[%s2911_s17] sm:$0xff] (%p2880_p3)  ;;  %v346_v1 = vld [vmem:[%s2911_s17 + $0x10] sm:$0xff] (%p2880_p3) }
  0x20   : > { %v348_v2 = vld [vmem:[%s2911_s17 + $0x20] sm:$0xff] (%p2880_p3)  ;;  %345 = vst [vmem:[%s282_s14] sm:$0xff] (%p2880_p3), %v344_v0  ;;  %347 = vst [vmem:[%s282_s14 + $0x8] sm:$0xff] (%p2880_p3), %v346_v1  ;;  %v350_v3 = vld [vmem:[%s2911_s17 + $0x30] sm:$0xff] (%p2880_p3) }
  0x21   : > { %349 = vst [vmem:[%s282_s14 + $0x10] sm:$0xff] %v348_v2  ;;  %v352_v4 = vld [vmem:[%s2911_s17 + $0x40] sm:$0xff]  ;;  %v354_v5 = vld [vmem:[%s2911_s17 + $0x50] sm:$0xff]  ;;  %351 = vst [vmem:[%s282_s14 + $0x18] sm:$0xff] %v350_v3 }
  0x22   : > { %353 = vst [vmem:[%s282_s14 + $0x20] sm:$0xff] %v352_v4  ;;  %355 = vst [vmem:[%s282_s14 + $0x28] sm:$0xff] %v354_v5  ;;  %v356_v6 = vld [vmem:[%s2911_s17 + $0x60] sm:$0xff]  ;;  %v358_v7 = vld [vmem:[%s2911_s17 + $0x70] sm:$0xff] }
  0x23   : > { %v360_v8 = vld [vmem:[%s2911_s17 + $0x80] sm:$0xff]  ;;  %357 = vst [vmem:[%s282_s14 + $0x30] sm:$0xff] %v356_v6  ;;  %359 = vst [vmem:[%s282_s14 + $0x38] sm:$0xff] %v358_v7  ;;  %v362_v9 = vld [vmem:[%s2911_s17 + $0x90] sm:$0xff] }
  0x24   : > { %361 = vst [vmem:[%s282_s14 + $0x40] sm:$0xff] %v360_v8  ;;  %v364_v10 = vld [vmem:[%s2911_s17 + $0xa0] sm:$0xff]  ;;  %v366_v11 = vld [vmem:[%s2911_s17 + $0xb0] sm:$0xff]  ;;  %363 = vst [vmem:[%s282_s14 + $0x48] sm:$0xff] %v362_v9 }
  0x25   : > { %365 = vst [vmem:[%s282_s14 + $0x50] sm:$0xff] %v364_v10  ;;  %367 = vst [vmem:[%s282_s14 + $0x58] sm:$0xff] %v366_v11  ;;  %v368_v12 = vld [vmem:[%s2911_s17 + $0xc0] sm:$0xff]  ;;  %v370_v13 = vld [vmem:[%s2911_s17 + $0xd0] sm:$0xff] }
  0x26   : > { %v372_v14 = vld [vmem:[%s2911_s17 + $0xe0] sm:$0xff]  ;;  %369 = vst [vmem:[%s282_s14 + $0x60] sm:$0xff] %v368_v12  ;;  %371 = vst [vmem:[%s282_s14 + $0x68] sm:$0xff] %v370_v13  ;;  %v374_v15 = vld [vmem:[%s2911_s17 + $0xf0] sm:$0xff] }
  0x27   : > { %373 = vst [vmem:[%s282_s14 + $0x70] sm:$0xff] %v372_v14  ;;  %375 = vst [vmem:[%s282_s14 + $0x78] sm:$0xff] %v374_v15 }
  0x28 PF: > { %p2216_p12 = scmp.ge.s32.totalorder %s2778_s8, 1  ;;  %p392_p13 = scmp.lt.s32.totalorder %s2778_s8, 5 }
  0x2a   : > { %p393_p0 = pnand %p2216_p12, %p392_p13 }
  0x2c   : > { %396 = sbr.rel (%p393_p0) target bundleno = 953 (0x3b9), region = 78 }
  0x33   : > { %p458_p1 = scmp.lt.s32.totalorder %s2766_s28, 1  ;;  %v2780_v16 = vmov 0   ;;  %s3942_s0 = sld [smem:[#allocation11_spill]] }
  0x34   : > { %2451 = vset.pattern.permute.xlu1 %v2780_v16  ;;  %2450 = vset.pattern.permute.xlu0 %v2780_v16  ;;  %s2781_s13 = smov 1   ;;  %p470_p2 = scmp.lt.s32.totalorder %s2762_s27, 1 }
  0x35   : > { %s2933_s12 = scalar_select %p458_p1, %s2766_s28, 1 }
  0x36   : > { %s471_s17 = scalar_select %p470_p2, %s2762_s27, 1 }
  0x37   : > { %s2258_s18 = sshll.u32 %s2933_s12, 7  ;;  %s3936_s9 = sand.u32 1, %s2754_s25  }
  0x38   : > { %s2939_s22 = scalar_lea.vmem %s3923_s1, %s2258_s18  ;;  %s2223_s14 = sshll.u32 %s471_s17, 4 }
  0x39   : > { %s2944_s10 = scalar_lea.vmem %s3942_s0, %s2258_s18  ;;  %v2947_v17 = vld [vmem:[%s2939_s22] sm:$0xff]  ;;  %v2955_v19 = vld [vmem:[%s2939_s22 + $0x8] sm:$0xff]  ;;  %v2971_v23 = vld [vmem:[%s2939_s22 + $0x18] sm:$0xff]  ;;  %s2224_s18 = sshll.u32 %s2933_s12, 5 }
  0x3a   : > { %v2950_v18 = vld [vmem:[%s2944_s10] sm:$0xff]  ;;  %633 = vperm.xlu1 %2451, %v2947_v17   ;;  %v2958_v20 = vld [vmem:[%s2944_s10 + $0x8] sm:$0xff]  ;;  %v2963_v21 = vld [vmem:[%s2944_s10 + $0x18] sm:$0xff]  ;;  %s3082_s19 = sadd.s32 %s2224_s18, %s2223_s14  ;;  %p791_p3 = scmp.eq.s32.totalorder %s2762_s27, 0 }
  0x3b   : > { %537 = vperm.xlu0 %2450, %v2950_v18   ;;  %v2966_v22 = vld [vmem:[%s2944_s10 + $0x10] sm:$0xff]  ;;  %v2977_v25 = vld [vmem:[%s2944_s10 + $0x28] sm:$0xff]  ;;  %v2980_v26 = vld [vmem:[%s2944_s10 + $0x20] sm:$0xff]  ;;  %s3935_s21 = sshll.u32 %s3082_s19, 3  ;;  %p891_p4 = scmp.eq.s32.totalorder %s2762_s27, 1 }
  0x3c   : > { %v2974_v24 = vld [vmem:[%s2939_s22 + $0x10] sm:$0xff]  ;;  %v2987_v27 = vld [vmem:[%s2939_s22 + $0x28] sm:$0xff]  ;;  %v2990_v28 = vld [vmem:[%s2939_s22 + $0x20] sm:$0xff]  ;;  %s3094_s23 = scalar_lea.vmem %s3925_s3, %s3935_s21  ;;  %s2782_s18 = smov 127  }
  0x3d   : > { %v2995_v29 = vld [vmem:[%s2944_s10 + $0x38] sm:$0xff]  ;;  %v2998_v30 = vld [vmem:[%s2944_s10 + $0x30] sm:$0xff]  ;;  %v3008_v33 = vld [vmem:[%s2944_s10 + $0x48] sm:$0xff]  ;;  %s3236_s14 = scalar_select %p891_p4, 1, 0 }
  0x3e   : > { %638 = vperm.xlu1 %2451, %v2955_v19   ;;  %v510_v31 = vld [vmem:[%s2939_s22 + $0x38] sm:$0xff]  ;;  %v3004_v32 = vld [vmem:[%s2939_s22 + $0x30] sm:$0xff]  ;;  %v495_v34 = vld [vmem:[%s2944_s10 + $0x40] sm:$0xff]  ;;  %s3955_s12 = sand.u32 1, %s2754_s25  }
  0x3f   : > { %542 = vperm.xlu0 %2450, %v2958_v20   ;;  %v3013_v35 = vld [vmem:[%s2939_s22 + $0x48] sm:$0xff]  ;;  %v511_v36 = vld [vmem:[%s2939_s22 + $0x40] sm:$0xff]  ;;  %v498_v37 = vld [vmem:[%s2944_s10 + $0x58] sm:$0xff]  ;;  %s3815_s21 = scalar_lea.sflag [#allocation4], %s3955_s12 }
  0x40   : > { %v3019_v38 = vld [vmem:[%s2944_s10 + $0x50] sm:$0xff]  ;;  %v514_v39 = vld [vmem:[%s2939_s22 + $0x58] sm:$0xff]  ;;  %v3028_v41 = vld [vmem:[%s2944_s10 + $0x68] sm:$0xff] }
  0x41   : > { %v3024_v40 = vld [vmem:[%s2939_s22 + $0x50] sm:$0xff]  ;;  %v3031_v42 = vld [vmem:[%s2944_s10 + $0x60] sm:$0xff]  ;;  %v3036_v43 = vld [vmem:[%s2939_s22 + $0x68] sm:$0xff] }
  0x42   : > { %552 = vperm.xlu1 %2451, %v2963_v21   ;;  %v3039_v44 = vld [vmem:[%s2939_s22 + $0x60] sm:$0xff]  ;;  %v3044_v45 = vld [vmem:[%s2944_s10 + $0x78] sm:$0xff]  ;;  %v3047_v46 = vld [vmem:[%s2944_s10 + $0x70] sm:$0xff]  ;;  %s3141_s10 = sshll.u32 %s3936_s9, 7 }
  0x43   : > { %547 = vperm.xlu0 %2450, %v2966_v22   ;;  %3943 = vst [vmem:[#allocation7_spill] sm:$0xff] %v3044_v45  ;;  %3944 = vst [vmem:[#allocation8_spill] sm:$0xff] %v3047_v46  ;;  %v3052_v47 = vld [vmem:[%s2939_s22 + $0x78] sm:$0xff]  ;;  %v3055_v48 = vld [vmem:[%s2939_s22 + $0x70] sm:$0xff]  ;;  %s3144_s17 = scalar_lea.vmem [#allocation2], %s3141_s10 }
  0x44   : > { %3945 = vst [vmem:[#allocation9_spill] sm:$0xff] %v3052_v47  ;;  %3946 = vst [vmem:[#allocation10_spill] sm:$0xff] %v3055_v48  ;;  %v3097_v49 = vld [vmem:[%s3094_s23 + $0x38] sm:$0xff]  ;;  %v3111_v52 = vld [vmem:[%s3094_s23 + $0x40] sm:$0xff] }
  0x45   : > { %v799_v50 = vmul.f32 %v3097_v49, %v2995_v29  ;;  %v800_v53 = vmul.f32 %v3111_v52, %v495_v34  ;;  %v3123_v55 = vld [vmem:[%s3094_s23 + $0x58] sm:$0xff]  ;;  %v519_v58 = vld [vmem:[%s3144_s17] sm:$0xff]  ;;  %v520_v62 = vld [vmem:[%s3144_s17 + $0x8] sm:$0xff] }
  0x46   : > { %648 = vperm.xlu1 %2451, %v2971_v23   ;;  %v803_v56 = vmul.f32 %v3123_v55, %v498_v37  ;;  %v522_v6 = vld [vmem:[%s3144_s17 + $0x18] sm:$0xff]  ;;  %v521_v8 = vld [vmem:[%s3144_s17 + $0x10] sm:$0xff] }
  0x47   : > { %643 = vperm.xlu0 %2450, %v2974_v24   ;;  %v3105_v51 = vadd.f32 %v799_v50, %v510_v31  ;;  %v3117_v54 = vadd.f32 %v800_v53, %v511_v36  ;;  %v523_v53 = vld [vmem:[%s3144_s17 + $0x20] sm:$0xff] }
  0x48   : > { %v3129_v57 = vadd.f32 %v803_v56, %v514_v39 }
  0x4a   : > { %562 = vperm.xlu1 %2451, %v2977_v25  }
  0x4b   : > { %557 = vperm.xlu0 %2450, %v2980_v26  }
  0x4e   : > { %658 = vperm.xlu1 %2451, %v2987_v27  }
  0x4f   : > { %653 = vperm.xlu0 %2450, %v2990_v28  }
  0x52   : > { %572 = vperm.xlu1 %2451, %v2995_v29  }
  0x53   : > { %567 = vperm.xlu0 %2450, %v2998_v30  }
  0x56   : > { %668 = vperm.xlu1 %2451, %v510_v31  }
  0x57   : > { %663 = vperm.xlu0 %2450, %v3004_v32  }
  0x5a   : > { %582 = vperm.xlu1 %2451, %v3008_v33  }
  0x5b   : > { %577 = vperm.xlu0 %2450, %v495_v34  }
  0x5e   : > { %678 = vperm.xlu1 %2451, %v3013_v35  }
  0x5f   : > { %673 = vperm.xlu0 %2450, %v511_v36  }
  0x62   : > { %592 = vperm.xlu1 %2451, %v498_v37  }
  0x63   : > { %587 = vperm.xlu0 %2450, %v3019_v38  }
  0x66   : > { %688 = vperm.xlu1 %2451, %v514_v39  }
  0x67   : > { %683 = vperm.xlu0 %2450, %v3024_v40  }
  0x6a   : > { %602 = vperm.xlu1 %2451, %v3028_v41  }
  0x6b   : > { %597 = vperm.xlu0 %2450, %v3031_v42  }
  0x6e   : > { %698 = vperm.xlu1 %2451, %v3036_v43  }
  0x6f   : > { %693 = vperm.xlu0 %2450, %v3039_v44  }
  0x72   : > { %612 = vperm.xlu1 %2451, %v3044_v45  }
  0x73   : > { %607 = vperm.xlu0 %2450, %v3047_v46  }
  0x76   : > { %708 = vperm.xlu1 %2451, %v3052_v47  }
  0x77   : > { %703 = vperm.xlu0 %2450, %v3055_v48  }
  0x7a   : > { %894 = vrot.lane.b32.xlu1 %v2958_v20, %s2781_s13 }
  0x7b   : > { %892 = vrot.lane.b32.xlu0 %v2950_v18, %s2781_s13 }
  0x7e   : > { %958 = vrot.lane.b32.xlu1 %v2955_v19, %s2781_s13 }
  0x7f   : > { %956 = vrot.lane.b32.xlu0 %v2947_v17, %s2781_s13 }
  0x82   : > { %898 = vrot.lane.b32.xlu1 %v2963_v21, %s2781_s13 }
  0x83   : > { %896 = vrot.lane.b32.xlu0 %v2966_v22, %s2781_s13 }
  0x86   : > { %962 = vrot.lane.b32.xlu1 %v2971_v23, %s2781_s13 }
  0x87   : > { %960 = vrot.lane.b32.xlu0 %v2974_v24, %s2781_s13 }
  0x8a   : > { %902 = vrot.lane.b32.xlu1 %v2977_v25, %s2781_s13 }
  0x8b   : > { %900 = vrot.lane.b32.xlu0 %v2980_v26, %s2781_s13 }
  0x8e   : > { %964 = vrot.lane.b32.xlu1 %v2990_v28, %s2781_s13 }
  0x8f   : > { %966 = vrot.lane.b32.xlu0 %v2987_v27, %s2781_s13 }
  0x92   : > { %904 = vrot.lane.b32.xlu1 %v2998_v30, %s2781_s13 }
  0x93   : > { %906 = vrot.lane.b32.xlu0 %v2995_v29, %s2781_s13 }
  0x96   : > { %970 = vrot.lane.b32.xlu1 %v510_v31, %s2781_s13 }
  0x97   : > { %968 = vrot.lane.b32.xlu0 %v3004_v32, %s2781_s13 }
  0x9a   : > { %910 = vrot.lane.b32.xlu1 %v3008_v33, %s2781_s13 }
  0x9b   : > { %908 = vrot.lane.b32.xlu0 %v495_v34, %s2781_s13 }
  0x9e   : > { %972 = vrot.lane.b32.xlu1 %v511_v36, %s2781_s13 }
  0x9f   : > { %974 = vrot.lane.b32.xlu0 %v3013_v35, %s2781_s13 }
  0xa2   : > { %912 = vrot.lane.b32.xlu1 %v3019_v38, %s2781_s13 }
  0xa3   : > { %914 = vrot.lane.b32.xlu0 %v498_v37, %s2781_s13 }
  0xa6   : > { %978 = vrot.lane.b32.xlu1 %v514_v39, %s2781_s13  ;;  %v524_v39 = vld [vmem:[%s3144_s17 + $0x28] sm:$0xff] }
  0xa7   : > { %976 = vrot.lane.b32.xlu0 %v3024_v40, %s2781_s13 }
  0xaa   : > { %918 = vrot.lane.b32.xlu1 %v3028_v41, %s2781_s13 }
  0xab   : > { %916 = vrot.lane.b32.xlu0 %v3031_v42, %s2781_s13 }
  0xb9   : > { %v634_v59 = vpop.permute.xlu1 %633 }
  0xba   : > { %v538_v60 = vpop.permute.xlu0 %537 }
  0xbb   : > { %v615_v61 = vmul.f32 %v538_v60, %v519_v58 }
  0xbd   : > { %v711_v63 = vadd.f32 %v634_v59, %v615_v61  ;;  %v639_v0 = vpop.permute.xlu1 %638 }
  0xbe   : > { %v543_v1 = vpop.permute.xlu0 %542 }
  0xbf   : > { %v616_v2 = vmul.f32 %v543_v1, %v520_v62  ;;  %v743_v3 = vmul.f32 0.2, %v711_v63  ;;  %vm727_vm0 = vcmp.ge.f32.partialorder %v711_v63, 0.0 }
  0xc1   : > { %v712_v4 = vadd.f32 %v639_v0, %v616_v2  ;;  %v553_v5 = vpop.permute.xlu1 %552  ;;  %v759_v12 = vsel %vm727_vm0, %v711_v63, %v743_v3 }
  0xc2   : > { %v548_v7 = vpop.permute.xlu0 %547  ;;  %v618_v10 = vmul.f32 %v553_v5, %v522_v6  ;;  %v526_v5 = vld [vmem:[%s3144_s17 + $0x38] sm:$0xff] }
  0xc3   : > { %v744_v9 = vmul.f32 0.2, %v712_v4  ;;  %vm728_vm1 = vcmp.ge.f32.partialorder %v712_v4, 0.0  ;;  %v617_v11 = vmul.f32 %v548_v7, %v521_v8  ;;  %v525_v7 = vld [vmem:[%s3144_s17 + $0x30] sm:$0xff] }
  0xc5   : > { %v760_v13 = vsel %vm728_vm1, %v712_v4, %v744_v9  ;;  %v649_v14 = vpop.permute.xlu1 %648 }
  0xc6   : > { %v644_v15 = vpop.permute.xlu0 %643  ;;  %v2452_v16 = vpack.i.bf16 %v760_v13, %v759_v12  ;;  %v714_v29 = vadd.f32 %v649_v14, %v618_v10 }
  0xc7   : > { %v713_v31 = vadd.f32 %v644_v15, %v617_v11 }
  0xc8   : > { %2453 = vrot.lane.b32.xlu0 %v2452_v16, %s2781_s13  ;;  %vm730_vm2 = vcmp.ge.f32.partialorder %v714_v29, 0.0  ;;  %v746_v34 = vmul.f32 0.2, %v714_v29 }
  0xc9   : > { %vm729_vm3 = vcmp.ge.f32.partialorder %v713_v31, 0.0  ;;  %v745_v36 = vmul.f32 0.2, %v713_v31  ;;  %v563_v37 = vpop.permute.xlu1 %562 }
  0xca   : > { %v558_v50 = vpop.permute.xlu0 %557  ;;  %v762_v58 = vsel %vm730_vm2, %v714_v29, %v746_v34  ;;  %v620_v60 = vmul.f32 %v563_v37, %v524_v39  ;;  %v527_v39 = vld [vmem:[%s3144_s17 + $0x40] sm:$0xff] }
  0xcb   : > { %v761_v56 = vsel %vm729_vm3, %v713_v31, %v745_v36  ;;  %v619_v61 = vmul.f32 %v558_v50, %v523_v53  ;;  %v528_v36 = vld [vmem:[%s3144_s17 + $0x48] sm:$0xff] }
  0xcc   : > { %v2457_v59 = vpack.i.bf16 %v762_v58, %v761_v56  ;;  %982 = vrot.lane.b32.xlu0 %v3036_v43, %s2781_s13 }
  0xcd   : > { %v659_v62 = vpop.permute.xlu1 %658 }
  0xce   : > { %v654_v63 = vpop.permute.xlu0 %653  ;;  %2458 = vrot.lane.b32.xlu1 %v2457_v59, %s2781_s13  ;;  %v716_v0 = vadd.f32 %v659_v62, %v620_v60 }
  0xcf   : > { %v715_v1 = vadd.f32 %v654_v63, %v619_v61 }
  0xd0   : > { %vm732_vm4 = vcmp.ge.f32.partialorder %v716_v0, 0.0  ;;  %v748_v2 = vmul.f32 0.2, %v716_v0 }
  0xd1   : > { %vm731_vm5 = vcmp.ge.f32.partialorder %v715_v1, 0.0  ;;  %v747_v3 = vmul.f32 0.2, %v715_v1  ;;  %v573_v4 = vpop.permute.xlu1 %572 }
  0xd2   : > { %v568_v6 = vpop.permute.xlu0 %567  ;;  %980 = vrot.lane.b32.xlu1 %v3039_v44, %s2781_s13  ;;  %v764_v9 = vsel %vm732_vm4, %v716_v0, %v748_v2  ;;  %v622_v11 = vmul.f32 %v573_v4, %v526_v5  ;;  %v529_v5 = vld [vmem:[%s3144_s17 + $0x50] sm:$0xff] }
  0xd3   : > { %v763_v8 = vsel %vm731_vm5, %v715_v1, %v747_v3  ;;  %v621_v12 = vmul.f32 %v568_v6, %v525_v7  ;;  %v530_v3 = vld [vmem:[%s3144_s17 + $0x58] sm:$0xff] }
  0xd4   : > { %v2462_v10 = vpack.i.bf16 %v764_v9, %v763_v8 }
  0xd5   : > { %v669_v13 = vpop.permute.xlu1 %668 }
  0xd6   : > { %v664_v14 = vpop.permute.xlu0 %663  ;;  %2463 = vrot.lane.b32.xlu0 %v2462_v10, %s2781_s13  ;;  %v718_v15 = vadd.f32 %v669_v13, %v622_v11 }
  0xd7   : > { %v717_v16 = vadd.f32 %v664_v14, %v621_v12 }
  0xd8   : > { %vm734_vm6 = vcmp.ge.f32.partialorder %v718_v15, 0.0  ;;  %v750_v29 = vmul.f32 0.2, %v718_v15 }
  0xd9   : > { %vm733_vm7 = vcmp.ge.f32.partialorder %v717_v16, 0.0  ;;  %v749_v31 = vmul.f32 0.2, %v717_v16  ;;  %v583_v34 = vpop.permute.xlu1 %582 }
  0xda   : > { %v578_v37 = vpop.permute.xlu0 %577  ;;  %922 = vrot.lane.b32.xlu0 %v3044_v45, %s2781_s13  ;;  %v766_v53 = vsel %vm734_vm6, %v718_v15, %v750_v29  ;;  %v624_v58 = vmul.f32 %v583_v34, %v528_v36  ;;  %v531_v36 = vld [vmem:[%s3144_s17 + $0x60] sm:$0xff] }
  0xdb   : > { %v765_v50 = vsel %vm733_vm7, %v717_v16, %v749_v31  ;;  %v623_v59 = vmul.f32 %v578_v37, %v527_v39  ;;  %v532_v31 = vld [vmem:[%s3144_s17 + $0x68] sm:$0xff] }
  0xdc   : > { %v2467_v56 = vpack.i.bf16 %v766_v53, %v765_v50 }
  0xdd   : > { %v679_v60 = vpop.permute.xlu1 %678 }
  0xde   : > { %v674_v61 = vpop.permute.xlu0 %673  ;;  %2468 = vrot.lane.b32.xlu1 %v2467_v56, %s2781_s13  ;;  %v720_v62 = vadd.f32 %v679_v60, %v624_v58 }
  0xdf   : > { %v719_v63 = vadd.f32 %v674_v61, %v623_v59 }
  0xe0   : > { %vm736_vm8 = vcmp.ge.f32.partialorder %v720_v62, 0.0  ;;  %v752_v0 = vmul.f32 0.2, %v720_v62 }
  0xe1   : > { %vm735_vm9 = vcmp.ge.f32.partialorder %v719_v63, 0.0  ;;  %v751_v1 = vmul.f32 0.2, %v719_v63  ;;  %v593_v2 = vpop.permute.xlu1 %592 }
  0xe2   : > { %v588_v4 = vpop.permute.xlu0 %587  ;;  %920 = vrot.lane.b32.xlu1 %v3047_v46, %s2781_s13  ;;  %v768_v7 = vsel %vm736_vm8, %v720_v62, %v752_v0  ;;  %v626_v9 = vmul.f32 %v593_v2, %v530_v3  ;;  %v533_v3 = vld [vmem:[%s3144_s17 + $0x70] sm:$0xff]  ;;  %v779_v46 = vld [vmem:[%s3094_s23 + $0x20] sm:$0xff] }
  0xe3   : > { %v767_v6 = vsel %vm735_vm9, %v719_v63, %v751_v1  ;;  %v625_v10 = vmul.f32 %v588_v4, %v529_v5  ;;  %v534_v1 = vld [vmem:[%s3144_s17 + $0x78] sm:$0xff]  ;;  %vm1151_vm9 = vcmask 7168   ;;  %s3766_s17 = scalar_lea.vmem [#allocation3], %s3141_s10  ;;  %s2254_s10 = sshll.u32 %s2766_s28, 5 }
  0xe4   : > { %v2472_v8 = vpack.i.bf16 %v768_v7, %v767_v6 }
  0xe5   : > { %v689_v11 = vpop.permute.xlu1 %688 }
  0xe6   : > { %v684_v12 = vpop.permute.xlu0 %683  ;;  %2473 = vrot.lane.b32.xlu0 %v2472_v8, %s2781_s13  ;;  %v722_v13 = vadd.f32 %v689_v11, %v626_v9 }
  0xe7   : > { %v721_v14 = vadd.f32 %v684_v12, %v625_v10 }
  0xe8   : > { %vm738_vm10 = vcmp.ge.f32.partialorder %v722_v13, 0.0  ;;  %v754_v15 = vmul.f32 0.2, %v722_v13 }
  0xe9   : > { %vm737_vm11 = vcmp.ge.f32.partialorder %v721_v14, 0.0  ;;  %v753_v16 = vmul.f32 0.2, %v721_v14  ;;  %v603_v29 = vpop.permute.xlu1 %602 }
  0xea   : > { %v598_v34 = vpop.permute.xlu0 %597  ;;  %984 = vrot.lane.b32.xlu0 %v3055_v48, %s2781_s13  ;;  %v770_v39 = vsel %vm738_vm10, %v722_v13, %v754_v15  ;;  %v628_v53 = vmul.f32 %v603_v29, %v532_v31 }
  0xeb   : > { %v769_v37 = vsel %vm737_vm11, %v721_v14, %v753_v16  ;;  %v627_v56 = vmul.f32 %v598_v34, %v531_v36 }
  0xec   : > { %v2477_v50 = vpack.i.bf16 %v770_v39, %v769_v37 }
  0xed   : > { %v699_v58 = vpop.permute.xlu1 %698 }
  0xee   : > { %v694_v59 = vpop.permute.xlu0 %693  ;;  %2478 = vrot.lane.b32.xlu1 %v2477_v50, %s2781_s13  ;;  %v724_v60 = vadd.f32 %v699_v58, %v628_v53 }
  0xef   : > { %v723_v61 = vadd.f32 %v694_v59, %v627_v56 }
  0xf0   : > { %vm740_vm12 = vcmp.ge.f32.partialorder %v724_v60, 0.0  ;;  %v756_v62 = vmul.f32 0.2, %v724_v60 }
  0xf1   : > { %vm739_vm13 = vcmp.ge.f32.partialorder %v723_v61, 0.0  ;;  %v755_v63 = vmul.f32 0.2, %v723_v61  ;;  %v613_v0 = vpop.permute.xlu1 %612 }
  0xf2   : > { %v608_v2 = vpop.permute.xlu0 %607  ;;  %986 = vrot.lane.b32.xlu1 %v3052_v47, %s2781_s13  ;;  %v772_v5 = vsel %vm740_vm12, %v724_v60, %v756_v62  ;;  %v630_v7 = vmul.f32 %v613_v0, %v534_v1 }
  0xf3   : > { %v771_v4 = vsel %vm739_vm13, %v723_v61, %v755_v63  ;;  %v629_v8 = vmul.f32 %v608_v2, %v533_v3  ;;  %vm831_vm13 = vcmp.ge.f32.partialorder %v3105_v51, 0.0 }
  0xf4   : > { %v2482_v6 = vpack.i.bf16 %v772_v5, %v771_v4  ;;  %v776_v5 = vld [vmem:[%s3094_s23 + $0x8] sm:$0xff] }
  0xf5   : > { %v709_v9 = vpop.permute.xlu1 %708 }
  0xf6   : > { %v704_v10 = vpop.permute.xlu0 %703  ;;  %2483 = vrot.lane.b32.xlu0 %v2482_v6, %s2781_s13  ;;  %v726_v11 = vadd.f32 %v709_v9, %v630_v7  ;;  %v793_v9 = vmul.f32 %v776_v5, %v2958_v20  ;;  %v780_v20 = vld [vmem:[%s3094_s23 + $0x28] sm:$0xff] }
  0xf7   : > { %v725_v12 = vadd.f32 %v704_v10, %v629_v8  ;;  %v775_v8 = vld [vmem:[%s3094_s23] sm:$0xff]  ;;  %v797_v45 = vmul.f32 %v780_v20, %v2977_v25 }
  0xf8   : > { %vm742_vm14 = vcmp.ge.f32.partialorder %v726_v11, 0.0  ;;  %v758_v13 = vmul.f32 0.2, %v726_v11  ;;  %v792_v10 = vmul.f32 %v775_v8, %v2950_v18 }
  0xf9   : > { %vm741_vm15 = vcmp.ge.f32.partialorder %v725_v12, 0.0  ;;  %v757_v14 = vmul.f32 0.2, %v725_v12  ;;  %v895_v16 = vpop.permute.xlu1 %894 }
  0xfa   : > { %v893_v15 = vpop.permute.xlu0 %892  ;;  %v774_v31 = vsel %vm742_vm14, %v726_v11, %v758_v13  ;;  %v777_v11 = vld [vmem:[%s3094_s23 + $0x10] sm:$0xff]  ;;  %v808_v48 = vadd.f32 %v792_v10, %v2947_v17 }
  0xfb   : > { %v773_v29 = vsel %vm741_vm15, %v725_v12, %v757_v14  ;;  %v778_v12 = vld [vmem:[%s3094_s23 + $0x18] sm:$0xff]  ;;  %v794_v13 = vmul.f32 %v777_v11, %v2966_v22  ;;  %v796_v22 = vmul.f32 %v779_v46, %v2980_v26 }
  0xfc   : > { %v2487_v34 = vpack.i.bf16 %v774_v31, %v773_v29  ;;  %v795_v14 = vmul.f32 %v778_v12, %v2963_v21  ;;  %v940_v29 = vmul.f32 %v893_v15, %v775_v8  ;;  %v809_v31 = vadd.f32 %v793_v9, %v2955_v19 }
  0xfd   : > { %v959_v37 = vpop.permute.xlu1 %958  ;;  %v810_v21 = vadd.f32 %v794_v13, %v2974_v24  ;;  %vm824_vm1 = vcmp.ge.f32.partialorder %v808_v48, 0.0  ;;  %v3239_v26 = vadd.f32 %v796_v22, %v2990_v28  ;;  %v3242_v24 = vadd.f32 %v797_v45, %v2987_v27  ;;  %v2666_v22 = vld [vmem:[%s3926_s4 + $0x8] ss:$12 sps:$4 sm:$0xff]  }
  0xfe   : > { %2488 = vrot.lane.b32.xlu1 %v2487_v34, %s2781_s13  ;;  %v957_v36 = vpop.permute.xlu0 %956  ;;  %v941_v34 = vmul.f32 %v895_v16, %v776_v5  ;;  %s872_s13 = scalar_select %p791_p3, 1, 0  ;;  %v811_v15 = vadd.f32 %v795_v14, %v2971_v23  ;;  %v841_v19 = vmul.f32 0.2, %v809_v31  ;;  %v840_v5 = vmul.f32 0.2, %v808_v48  ;;  %2356 = vmatprep.mubr.bf16.mxu1 %v2666_v22 }
  0xff   : > { %v1004_v17 = vadd.f32 %v957_v36, %v940_v29  ;;  %vm825_vm0 = vcmp.ge.f32.partialorder %v809_v31, 0.0  ;;  %vm826_vm2 = vcmp.ge.f32.partialorder %v810_v21, 0.0  ;;  %v842_v23 = vmul.f32 0.2, %v810_v21  ;;  %v781_v29 = vld [vmem:[%s3094_s23 + $0x30] sm:$0xff] }
 0x100   : > { %v1005_v16 = vadd.f32 %v959_v37, %v941_v34  ;;  %v873_v9 = vstv %s872_s13  ;;  %v843_v25 = vmul.f32 0.2, %v811_v15  ;;  %v1069_v36 = vstv %s3236_s14  ;;  %s2034_s13 = sadd.s32 %s2762_s27, %s2254_s10  ;;  %s2784_s27 = smov [#allocation3]  }
 0x101   : > { %v899_v50 = vpop.permute.xlu1 %898  ;;  %v1036_v14 = vmul.f32 0.2, %v1004_v17  ;;  %vm3249_vm3 = vcmp.eq.s32.totalorder %v873_v9, 1  ;;  %vm1020_vm4 = vcmp.ge.f32.partialorder %v1004_v17, 0.0  ;;  %v856_v28 = vsel %vm824_vm1, %v808_v48, %v840_v5  ;;  %s2255_s0 = sshll.u32 %s2034_s13, 7  ;;  %s2688_s28 = sshll.u32 %s2784_s27, 4  ;;  %s2689_s28 = int_to_ptr.vmem [resolvable:$false] %s2688_s28 }
 0x102   : > { %v897_v39 = vpop.permute.xlu0 %896  ;;  %v943_v10 = vmul.f32 %v899_v50, %v778_v12  ;;  %vm1021_vm5 = vcmp.ge.f32.partialorder %v1005_v16, 0.0  ;;  %vm827_vm6 = vcmp.ge.f32.partialorder %v811_v15, 0.0  ;;  %v3255_v45 = vmul.f32 0.2, %v3239_v26  ;;  %s3809_s22 = scalar_lea.hbm %s3928_s6, %s2255_s0 }
 0x103   : > { %v942_v8 = vmul.f32 %v897_v39, %v777_v11  ;;  %v1037_v39 = vmul.f32 0.2, %v1005_v16  ;;  %v857_v11 = vsel %vm825_vm0, %v809_v31, %v841_v19  ;;  %vm829_vm7 = vcmp.ge.f32.partialorder %v3242_v24, 0.0 }
 0x104   : > { %v845_v31 = vmul.f32 0.2, %v3242_v24  ;;  %v798_v34 = vmul.f32 %v781_v29, %v2998_v30  ;;  %vm3262_vm8 = vcmp.eq.s32.totalorder %v1069_v36, 1  ;;  %v876_v48 = vsel %vm3249_vm3, 0.0, %v857_v11 }
 0x105   : > { %v3182_v56 = vpop.permute.xlu1 %962  ;;  %v1053_v19 = vsel %vm1021_vm5, %v1005_v16, %v1037_v39  ;;  %vm828_vm10 = vcmp.ge.f32.partialorder %v3239_v26, 0.0  ;;  %v858_v36 = vsel %vm826_vm2, %v810_v21, %v842_v23  ;;  %v847_v23 = vmul.f32 0.2, %v3105_v51 }
 0x106   : > { %v961_v53 = vpop.permute.xlu0 %960  ;;  %v1007_v12 = vadd.f32 %v3182_v56, %v943_v10  ;;  %v875_v56 = vsel %vm3249_vm3, 0.0, %v856_v28  ;;  %v859_v10 = vsel %vm827_vm6, %v811_v15, %v843_v25  ;;  %v1072_v39 = vsel %vm3262_vm8, 0.0, %v1053_v19 }
 0x107   : > { %v1006_v27 = vadd.f32 %v961_v53, %v942_v8  ;;  %v1052_v53 = vsel %vm1020_vm4, %v1004_v17, %v1036_v14  ;;  %vm832_vm4 = vcmp.ge.f32.partialorder %v3117_v54, 0.0 }
 0x108   : > { %v1039_v17 = vmul.f32 0.2, %v1007_v12  ;;  %vm1023_vm12 = vcmp.ge.f32.partialorder %v1007_v12, 0.0 }
 0x109   : > { %v3186_v59 = vpop.permute.xlu1 %902  ;;  %v1038_v5 = vmul.f32 0.2, %v1006_v27  ;;  %vm1022_vm11 = vcmp.ge.f32.partialorder %v1006_v27, 0.0 }
 0x10a   : > { %v3184_v58 = vpop.permute.xlu0 %900  ;;  %v945_v8 = vmul.f32 %v3186_v59, %v780_v20  ;;  %v1071_v59 = vsel %vm3262_vm8, 0.0, %v1052_v53 }
 0x10b   : > { %v944_v11 = vmul.f32 %v3184_v58, %v779_v46  ;;  %v1054_v53 = vsel %vm1022_vm11, %v1006_v27, %v1038_v5  ;;  %v877_v27 = vsel %vm3249_vm3, 0.0, %v858_v36 }
 0x10c   : > { %v1073_v36 = vsel %vm3262_vm8, 0.0, %v1054_v53 }
 0x10d   : > { %v3190_v61 = vpop.permute.xlu1 %964 }
 0x10e   : > { %v3188_v60 = vpop.permute.xlu0 %966  ;;  %v1008_v19 = vadd.f32 %v3190_v61, %v944_v11  ;;  %v878_v61 = vsel %vm3249_vm3, 0.0, %v859_v10 }
 0x10f   : > { %v1009_v15 = vadd.f32 %v3188_v60, %v945_v8 }
 0x110   : > { %vm1024_vm15 = vcmp.ge.f32.partialorder %v1008_v19, 0.0 }
 0x111   : > { %v3196_v0 = vpop.permute.xlu1 %904  ;;  %v1041_v5 = vmul.f32 0.2, %v1009_v15  ;;  %vm1025_vm14 = vcmp.ge.f32.partialorder %v1009_v15, 0.0 }
 0x112   : > { %v3192_v62 = vpop.permute.xlu0 %906  ;;  %v946_v11 = vmul.f32 %v3196_v0, %v781_v29 }
 0x115   : > { %v3200_v2 = vpop.permute.xlu1 %970 }
 0x116   : > { %v3194_v63 = vpop.permute.xlu0 %968 }
 0x117   : > { %v1010_v53 = vadd.f32 %v3194_v63, %v946_v11 }
 0x119   : > { %v3204_v4 = vpop.permute.xlu1 %910  ;;  %vm1026_vm2 = vcmp.ge.f32.partialorder %v1010_v53, 0.0 }
 0x11a   : > { %v3198_v1 = vpop.permute.xlu0 %908 }
 0x11d   : > { %v3209_v7 = vpop.permute.xlu1 %972 }
 0x11e   : > { %v3202_v3 = vpop.permute.xlu0 %974 }
 0x121   : > { %v3226_v18 = vpop.permute.xlu1 %912 }
 0x122   : > { %v3207_v6 = vpop.permute.xlu0 %914 }
 0x125   : > { %v3247_v37 = vpop.permute.xlu1 %978 }
 0x126   : > { %v3224_v47 = vpop.permute.xlu0 %976 }
 0x129   : > { %v3272_v30 = vpop.permute.xlu1 %918 }
 0x12a   : > { %v3244_v13 = vpop.permute.xlu0 %916 }
 0x13a   : > { %v2454_v9 = vpop.permute.xlu0 %2453 }
 0x13b   : > { %v2456_v16 = vunpack.i.h.bf16 %v2454_v9  ;;  %v2455_v14 = vunpack.i.l.bf16 %v2454_v9  ;;  %v784_v9 = vld [vmem:[%s3094_s23 + $0x48] sm:$0xff] }
 0x13c   : > { %v801_v60 = vmul.f32 %v784_v9, %v3008_v33  ;;  %v861_v33 = vsel %vm829_vm7, %v3242_v24, %v845_v31 }
 0x13d   : > { %v3283_v20 = vsel %vm1151_vm9, %v876_v48, %v2456_v16  ;;  %v1169_v21 = vsel %vm1151_vm9, %v2456_v16, %v1072_v39  ;;  %v3287_v46 = vsel %vm1151_vm9, %v875_v56, %v2455_v14  ;;  %v1168_v58 = vsel %vm1151_vm9, %v2455_v14, %v1071_v59 }
 0x13e   : > { %v3293_v25 = vpack.i.bf16 %v1169_v21, %v3283_v20  ;;  %v3296_v28 = vpack.i.bf16 %v1168_v58, %v3287_v46  ;;  %v1055_v48 = vsel %vm1023_vm12, %v1007_v12, %v1039_v17  ;;  %v1410_v56 = vpack.c.bf16 %v3283_v20, %v3287_v46  ;;  %v3320_v17 = vpop.permute.xlu0 %982 }
 0x13f   : > { %v3303_v16 = vadd.f32 %v798_v34, %v3004_v32  ;;  %v947_v32 = vmul.f32 %v3192_v62, %v3097_v49  ;;  %v1074_v10 = vsel %vm3262_vm8, 0.0, %v1055_v48  ;;  %v1040_v14 = vmul.f32 0.2, %v1008_v19 }
 0x140   : > { %v2459_v8 = vpop.permute.xlu1 %2458  ;;  %2498 = vrot.lane.b32.xlu1 %v3293_v25, %s2782_s18  ;;  %2493 = vrot.lane.b32.xlu0 %v3296_v28, %s2782_s18  ;;  %v860_v59 = vsel %vm828_vm10, %v3239_v26, %v3255_v45  ;;  %v3351_v48 = vmul.f32 0.2, %v3117_v54  ;;  %v1057_v45 = vsel %vm1025_vm14, %v1009_v15, %v1041_v5  ;;  %v1042_v15 = vmul.f32 0.2, %v1010_v53 }
 0x141   : > { %v2461_v12 = vunpack.i.h.bf16 %v2459_v8  ;;  %v2460_v34 = vunpack.i.l.bf16 %v2459_v8  ;;  %v1011_v31 = vadd.f32 %v3200_v2, %v947_v32  ;;  %vm830_vm0 = vcmp.ge.f32.partialorder %v3303_v16, 0.0  ;;  %v785_v2 = vld [vmem:[%s3094_s23 + $0x50] sm:$0xff] }
 0x142   : > { %v846_v58 = vmul.f32 0.2, %v3303_v16  ;;  %v1056_v8 = vsel %vm1024_vm15, %v1008_v19, %v1040_v14  ;;  %v802_v26 = vmul.f32 %v785_v2, %v3019_v38  ;;  %v880_v32 = vsel %vm3249_vm3, 0.0, %v861_v33 }
 0x143   : > { %v3327_v49 = vsel %vm1151_vm9, %v878_v61, %v2461_v12  ;;  %v1171_v62 = vsel %vm1151_vm9, %v2461_v12, %v1074_v10  ;;  %v3331_v24 = vsel %vm1151_vm9, %v877_v27, %v2460_v34  ;;  %v1170_v29 = vsel %vm1151_vm9, %v2460_v34, %v1073_v36 }
 0x144   : > { %v3334_v0 = vpack.i.bf16 %v1171_v62, %v3327_v49  ;;  %v3339_v39 = vpack.i.bf16 %v1170_v29, %v3331_v24  ;;  %v1411_v21 = vpack.c.bf16 %v3327_v49, %v3331_v24  ;;  %v817_v61 = vadd.f32 %v801_v60, %v3013_v35 }
 0x145   : > { %v949_v27 = vmul.f32 %v3204_v4, %v784_v9  ;;  %v879_v12 = vsel %vm3249_vm3, 0.0, %v860_v59  ;;  %v863_v35 = vsel %vm831_vm13, %v3105_v51, %v847_v23  ;;  %v948_v38 = vmul.f32 %v3198_v1, %v3111_v52  ;;  %v3371_v4 = vpop.permute.xlu1 %980  ;;  %v787_v59 = vld [vmem:[%s3094_s23 + $0x60] sm:$0xff] }
 0x146   : > { %2508 = vrot.lane.b32.xlu1 %v3334_v0, %s2782_s18  ;;  %2503 = vrot.lane.b32.xlu0 %v3339_v39, %s2782_s18  ;;  %v1043_v19 = vmul.f32 0.2, %v1011_v31  ;;  %vm1027_vm1 = vcmp.ge.f32.partialorder %v1011_v31, 0.0  ;;  %v1076_v9 = vsel %vm3262_vm8, 0.0, %v1057_v45  ;;  %v1075_v33 = vsel %vm3262_vm8, 0.0, %v1056_v8  ;;  %v788_v8 = vld [vmem:[%s3094_s23 + $0x68] sm:$0xff] }
 0x147   : > { %v1013_v23 = vadd.f32 %v3202_v3, %v949_v27  ;;  %v1012_v14 = vadd.f32 %v3209_v7, %v948_v38  ;;  %v862_v62 = vsel %vm830_vm0, %v3303_v16, %v846_v58  ;;  %vm833_vm5 = vcmp.ge.f32.partialorder %v817_v61, 0.0 }
 0x148   : > { %v2464_v63 = vpop.permute.xlu0 %2463  ;;  %v1059_v36 = vsel %vm1027_vm1, %v1011_v31, %v1043_v19  ;;  %v849_v3 = vmul.f32 0.2, %v817_v61  ;;  %v818_v7 = vadd.f32 %v802_v26, %v3024_v40  ;;  %v804_v31 = vmul.f32 %v787_v59, %v3031_v42 }
 0x149   : > { %v2466_v60 = vunpack.i.h.bf16 %v2464_v63  ;;  %v2465_v34 = vunpack.i.l.bf16 %v2464_v63  ;;  %v805_v16 = vmul.f32 %v788_v8, %v3028_v41  ;;  %v1058_v58 = vsel %vm1026_vm2, %v1010_v53, %v1042_v15 }
 0x14a   : > { %v1045_v45 = vmul.f32 0.2, %v1013_v23  ;;  %v882_v63 = vsel %vm3249_vm3, 0.0, %v863_v35  ;;  %v1044_v38 = vmul.f32 0.2, %v1012_v14  ;;  %v950_v40 = vmul.f32 %v3226_v18, %v785_v2 }
 0x14b   : > { %v3378_v5 = vsel %vm1151_vm9, %v880_v32, %v2466_v60  ;;  %v1173_v51 = vsel %vm1151_vm9, %v2466_v60, %v1076_v9  ;;  %v3382_v52 = vsel %vm1151_vm9, %v879_v12, %v2465_v34  ;;  %v1172_v1 = vsel %vm1151_vm9, %v2465_v34, %v1075_v33 }
 0x14c   : > { %v3387_v11 = vpack.i.bf16 %v1173_v51, %v3378_v5  ;;  %v3390_v10 = vpack.i.bf16 %v1172_v1, %v3382_v52  ;;  %v1412_v29 = vpack.c.bf16 %v3378_v5, %v3382_v52  ;;  %v1078_v32 = vsel %vm3262_vm8, 0.0, %v1059_v36  ;;  %v3418_v53 = vpop.permute.xlu0 %922 }
 0x14d   : > { %v881_v12 = vsel %vm3249_vm3, 0.0, %v862_v62  ;;  %vm1029_vm6 = vcmp.ge.f32.partialorder %v1013_v23, 0.0  ;;  %v951_v41 = vmul.f32 %v3207_v6, %v3123_v55  ;;  %vm1028_vm7 = vcmp.ge.f32.partialorder %v1012_v14, 0.0 }
 0x14e   : > { %2518 = vrot.lane.b32.xlu1 %v3387_v11, %s2782_s18  ;;  %2513 = vrot.lane.b32.xlu0 %v3390_v10, %s2782_s18  ;;  %v1077_v35 = vsel %vm3262_vm8, 0.0, %v1058_v58  ;;  %v865_v6 = vsel %vm833_vm5, %v817_v61, %v849_v3  ;;  %v864_v15 = vsel %vm832_vm4, %v3117_v54, %v3351_v48  ;;  %v1060_v9 = vsel %vm1028_vm7, %v1012_v14, %v1044_v38 }
 0x14f   : > { %v1014_v33 = vadd.f32 %v3224_v47, %v950_v40  ;;  %v1061_v51 = vsel %vm1029_vm6, %v1013_v23, %v1045_v45  ;;  %vm835_vm10 = vcmp.ge.f32.partialorder %v3129_v57, 0.0  ;;  %v851_v36 = vmul.f32 0.2, %v3129_v57 }
 0x150   : > { %v2469_v27 = vpop.permute.xlu1 %2468  ;;  %v1015_v62 = vadd.f32 %v3247_v37, %v951_v41  ;;  %vm834_vm11 = vcmp.ge.f32.partialorder %v818_v7, 0.0  ;;  %v850_v54 = vmul.f32 0.2, %v818_v7  ;;  %v820_v47 = vadd.f32 %v804_v31, %v3039_v44 }
 0x151   : > { %v2471_v26 = vunpack.i.h.bf16 %v2469_v27  ;;  %v2470_v42 = vunpack.i.l.bf16 %v2469_v27  ;;  %v821_v48 = vadd.f32 %v805_v16, %v3036_v43  ;;  %v884_v23 = vsel %vm3249_vm3, 0.0, %v865_v6 }
 0x152   : > { %v1080_v37 = vsel %vm3262_vm8, 0.0, %v1061_v51  ;;  %v883_v14 = vsel %vm3249_vm3, 0.0, %v864_v15  ;;  %v1079_v3 = vsel %vm3262_vm8, 0.0, %v1060_v9  ;;  %vm1030_vm12 = vcmp.ge.f32.partialorder %v1014_v33, 0.0  ;;  %v3952_v9 = vld [vmem:[#allocation9_spill] sm:$0xff]  ;;  %v3953_v51 = vld [vmem:[#allocation8_spill] sm:$0xff] }
 0x153   : > { %v3423_v19 = vsel %vm1151_vm9, %v882_v63, %v2471_v26  ;;  %v1175_v60 = vsel %vm1151_vm9, %v2471_v26, %v1078_v32  ;;  %v3427_v34 = vsel %vm1151_vm9, %v881_v12, %v2470_v42  ;;  %v1174_v18 = vsel %vm1151_vm9, %v2470_v42, %v1077_v35  ;;  %v790_v63 = vld [vmem:[%s3094_s23 + $0x78] sm:$0xff]  ;;  %v3951_v26 = vld [vmem:[#allocation7_spill] sm:$0xff] }
 0x154   : > { %v3431_v2 = vpack.i.bf16 %v1175_v60, %v3423_v19  ;;  %v3434_v55 = vpack.i.bf16 %v1174_v18, %v3427_v34  ;;  %v1413_v1 = vpack.c.bf16 %v3423_v19, %v3427_v34  ;;  %v1046_v58 = vmul.f32 0.2, %v1014_v33  ;;  %v921_v27 = vpop.permute.xlu1 %920 }
 0x155   : > { %v952_v31 = vmul.f32 %v3244_v13, %v787_v59  ;;  %vm1031_vm13 = vcmp.ge.f32.partialorder %v1015_v62, 0.0  ;;  %v1047_v43 = vmul.f32 0.2, %v1015_v62  ;;  %v953_v16 = vmul.f32 %v3272_v30, %v788_v8 }
 0x156   : > { %2528 = vrot.lane.b32.xlu1 %v3431_v2, %s2782_s18  ;;  %2523 = vrot.lane.b32.xlu0 %v3434_v55, %s2782_s18  ;;  %v807_v42 = vmul.f32 %v790_v63, %v3951_v26  ;;  %v866_v59 = vsel %vm834_vm11, %v818_v7, %v850_v54  ;;  %v1062_v8 = vsel %vm1030_vm12, %v1014_v33, %v1046_v58  ;;  %vm836_vm14 = vcmp.ge.f32.partialorder %v820_v47, 0.0 }
 0x157   : > { %v867_v41 = vsel %vm835_vm10, %v3129_v57, %v851_v36  ;;  %v1063_v60 = vsel %vm1031_vm13, %v1015_v62, %v1047_v43  ;;  %v1017_v18 = vadd.f32 %v3320_v17, %v953_v16  ;;  %v1016_v6 = vadd.f32 %v3371_v4, %v952_v31  ;;  %v789_v57 = vld [vmem:[%s3094_s23 + $0x70] sm:$0xff]  ;;  %s2783_s23 = smov 126  }
 0x158   : > { %v2474_v61 = vpop.permute.xlu0 %2473  ;;  %v852_v7 = vmul.f32 0.2, %v820_v47  ;;  %vm837_vm15 = vcmp.ge.f32.partialorder %v821_v48, 0.0  ;;  %v853_v15 = vmul.f32 0.2, %v821_v48  ;;  %v823_v33 = vadd.f32 %v807_v42, %v3952_v9 }
 0x159   : > { %v2476_v45 = vunpack.i.h.bf16 %v2474_v61  ;;  %v2475_v44 = vunpack.i.l.bf16 %v2474_v61  ;;  %v806_v36 = vmul.f32 %v789_v57, %v3953_v51  ;;  %v886_v17 = vsel %vm3249_vm3, 0.0, %v867_v41 }
 0x15a   : > { %v885_v4 = vsel %vm3249_vm3, 0.0, %v866_v59  ;;  %v1082_v62 = vsel %vm3262_vm8, 0.0, %v1063_v60  ;;  %vm1033_vm0 = vcmp.ge.f32.partialorder %v1017_v18, 0.0  ;;  %v954_v58 = vmul.f32 %v921_v27, %v789_v57 }
 0x15b   : > { %v3465_v32 = vsel %vm1151_vm9, %v884_v23, %v2476_v45  ;;  %v1177_v12 = vsel %vm1151_vm9, %v2476_v45, %v1080_v37  ;;  %v3469_v38 = vsel %vm1151_vm9, %v883_v14, %v2475_v44  ;;  %v1176_v40 = vsel %vm1151_vm9, %v2475_v44, %v1079_v3 }
 0x15c   : > { %v3474_v13 = vpack.i.bf16 %v1177_v12, %v3465_v32  ;;  %v3477_v30 = vpack.i.bf16 %v1176_v40, %v3469_v38  ;;  %v1414_v35 = vpack.c.bf16 %v3465_v32, %v3469_v38  ;;  %v1081_v37 = vsel %vm3262_vm8, 0.0, %v1062_v8  ;;  %v985_v45 = vpop.permute.xlu0 %984  ;;  %v3954_v8 = vld [vmem:[#allocation10_spill] sm:$0xff] }
 0x15d   : > { %v1049_v14 = vmul.f32 0.2, %v1017_v18  ;;  %v1048_v3 = vmul.f32 0.2, %v1016_v6  ;;  %vm1032_vm1 = vcmp.ge.f32.partialorder %v1016_v6, 0.0  ;;  %v955_v12 = vmul.f32 %v3418_v53, %v790_v63 }
 0x15e   : > { %2538 = vrot.lane.b32.xlu1 %v3474_v13, %s2782_s18  ;;  %2533 = vrot.lane.b32.xlu0 %v3477_v30, %s2782_s18  ;;  %v868_v42 = vsel %vm836_vm14, %v820_v47, %v852_v7  ;;  %v869_v59 = vsel %vm837_vm15, %v821_v48, %v853_v15  ;;  %v822_v41 = vadd.f32 %v806_v36, %v3954_v8  ;;  %vm839_vm2 = vcmp.ge.f32.partialorder %v823_v33, 0.0 }
 0x15f   : > { %v1018_v9 = vadd.f32 %v985_v45, %v954_v58  ;;  %v1065_v53 = vsel %vm1033_vm0, %v1017_v18, %v1049_v14  ;;  %v1064_v63 = vsel %vm1032_vm1, %v1016_v6, %v1048_v3  ;;  %v855_v47 = vmul.f32 0.2, %v823_v33 }
 0x160   : > { %v2479_v54 = vpop.permute.xlu1 %2478  ;;  %v888_v48 = vsel %vm3249_vm3, 0.0, %v869_v59  ;;  %v887_v15 = vsel %vm3249_vm3, 0.0, %v868_v42  ;;  %vm838_vm4 = vcmp.ge.f32.partialorder %v822_v41, 0.0  ;;  %v854_v51 = vmul.f32 0.2, %v822_v41 }
 0x161   : > { %v2481_v61 = vunpack.i.h.bf16 %v2479_v54  ;;  %v2480_v23 = vunpack.i.l.bf16 %v2479_v54  ;;  %v1083_v18 = vsel %vm3262_vm8, 0.0, %v1064_v63  ;;  %vm1034_vm6 = vcmp.ge.f32.partialorder %v1018_v9, 0.0 }
 0x162   : > { %v871_v58 = vsel %vm839_vm2, %v823_v33, %v855_v47  ;;  %v870_v45 = vsel %vm838_vm4, %v822_v41, %v854_v51  ;;  %v2654_v33 = vld [vmem:[%s3926_s4 + $0x4] ss:$12 sps:$4 sm:$0xff]   ;;  %v1479_v51 = vld [vmem:[%s3927_s5 + $0x68] sm:$0xff] }
 0x163   : > { %v3505_v44 = vsel %vm1151_vm9, %v886_v17, %v2481_v61  ;;  %v1179_v31 = vsel %vm1151_vm9, %v2481_v61, %v1082_v62  ;;  %v3509_v43 = vsel %vm1151_vm9, %v885_v4, %v2480_v23  ;;  %v1178_v16 = vsel %vm1151_vm9, %v2480_v23, %v1081_v37  ;;  %1722 = vmatprep.mubr.bf16.mxu0 %v2654_v33 }
 0x164   : > { %v987_v40 = vpop.permute.xlu1 %986  ;;  %v3514_v26 = vpack.i.bf16 %v1179_v31, %v3505_v44  ;;  %v3517_v27 = vpack.i.bf16 %v1178_v16, %v3509_v43  ;;  %v1415_v60 = vpack.c.bf16 %v3505_v44, %v3509_v43  ;;  %v1084_v17 = vsel %vm3262_vm8, 0.0, %v1065_v53 }
 0x165   : > { %v1019_v57 = vadd.f32 %v987_v40, %v955_v12  ;;  %v1050_v4 = vmul.f32 0.2, %v1018_v9  ;;  %v890_v42 = vsel %vm3249_vm3, 0.0, %v871_v58  ;;  %v889_v59 = vsel %vm3249_vm3, 0.0, %v870_v45 }
 0x166   : > { %2548 = vrot.lane.b32.xlu1 %v3514_v26, %s2782_s18  ;;  %2543 = vrot.lane.b32.xlu0 %v3517_v27, %s2782_s18  ;;  %vm1280_vm3 = vcmask 1039360  }
 0x167   : > { %v1051_v6 = vmul.f32 0.2, %v1019_v57  ;;  %vm1035_vm5 = vcmp.ge.f32.partialorder %v1019_v57, 0.0  ;;  %v1066_v12 = vsel %vm1034_vm6, %v1018_v9, %v1050_v4 }
 0x168   : > { %v2484_v7 = vpop.permute.xlu0 %2483 }
 0x169   : > { %v2486_v36 = vunpack.i.h.bf16 %v2484_v7  ;;  %v2485_v54 = vunpack.i.l.bf16 %v2484_v7  ;;  %v1067_v16 = vsel %vm1035_vm5, %v1019_v57, %v1051_v6  ;;  %v1085_v57 = vsel %vm3262_vm8, 0.0, %v1066_v12 }
 0x16a   : > { %v1086_v53 = vsel %vm3262_vm8, 0.0, %v1067_v16  ;;  %vm1377_vm8 = vcmask 1031168  }
 0x16b   : > { %v3538_v62 = vsel %vm1151_vm9, %v888_v48, %v2486_v36  ;;  %v1181_v61 = vsel %vm1151_vm9, %v2486_v36, %v1084_v17  ;;  %v3542_v23 = vsel %vm1151_vm9, %v887_v15, %v2485_v54  ;;  %v1180_v37 = vsel %vm1151_vm9, %v2485_v54, %v1083_v18  ;;  %v1478_v36 = vld [vmem:[%s3927_s5 + $0x60] sm:$0xff] }
 0x16c   : > { %v2557_v14 = vpack.i.bf16 %v1181_v61, %v3538_v62  ;;  %v2552_v3 = vpack.i.bf16 %v1180_v37, %v3542_v23  ;;  %v1416_v31 = vpack.c.bf16 %v3538_v62, %v3542_v23  ;;  %v1481_v37 = vld [vmem:[%s3927_s5 + $0x78] sm:$0xff]  ;;  %v2652_v62 = vld [vmem:[%s3926_s4] ss:$12 sps:$4 sm:$0xff]  }
 0x16e   : > { %2558 = vrot.lane.b32.xlu1 %v2557_v14, %s2782_s18  ;;  %2553 = vrot.lane.b32.xlu0 %v2552_v3, %s2782_s18 }
 0x170   : > { %v2489_v40 = vpop.permute.xlu1 %2488 }
 0x171   : > { %v2491_v8 = vunpack.i.h.bf16 %v2489_v40  ;;  %v2490_v41 = vunpack.i.l.bf16 %v2489_v40 }
 0x173   : > { %v3565_v9 = vsel %vm1151_vm9, %v890_v42, %v2491_v8  ;;  %v1183_v63 = vsel %vm1151_vm9, %v2491_v8, %v1086_v53  ;;  %v3569_v50 = vsel %vm1151_vm9, %v889_v59, %v2490_v41  ;;  %v1182_v47 = vsel %vm1151_vm9, %v2490_v41, %v1085_v57 }
 0x174   : > { %v2567_v7 = vpack.i.bf16 %v1183_v63, %v3565_v9  ;;  %v2562_v48 = vpack.i.bf16 %v1182_v47, %v3569_v50  ;;  %v1417_v15 = vpack.c.bf16 %v3565_v9, %v3569_v50 }
 0x176   : > { %2568 = vrot.lane.b32.xlu1 %v2567_v7, %s2782_s18  ;;  %2563 = vrot.lane.b32.xlu0 %v2562_v48, %s2782_s18 }
 0x17a   : > { %2578 = vrot.lane.b32.xlu1 %v3293_v25, %s2783_s23  ;;  %2573 = vrot.lane.b32.xlu0 %v3296_v28, %s2783_s23  ;;  %v1467_v25 = vld [vmem:[%s3927_s5 + $0x8] sm:$0xff]  ;;  %v1466_v28 = vld [vmem:[%s3927_s5] sm:$0xff] }
 0x17e   : > { %2588 = vrot.lane.b32.xlu1 %v3334_v0, %s2783_s23  ;;  %2583 = vrot.lane.b32.xlu0 %v3339_v39, %s2783_s23  ;;  %v1469_v0 = vld [vmem:[%s3927_s5 + $0x18] sm:$0xff]  ;;  %v1468_v39 = vld [vmem:[%s3927_s5 + $0x10] sm:$0xff] }
 0x182   : > { %2598 = vrot.lane.b32.xlu1 %v3387_v11, %s2783_s23  ;;  %2593 = vrot.lane.b32.xlu0 %v3390_v10, %s2783_s23  ;;  %v1471_v11 = vld [vmem:[%s3927_s5 + $0x28] sm:$0xff]  ;;  %v1470_v10 = vld [vmem:[%s3927_s5 + $0x20] sm:$0xff] }
 0x186   : > { %2608 = vrot.lane.b32.xlu1 %v3431_v2, %s2783_s23  ;;  %2603 = vrot.lane.b32.xlu0 %v3434_v55, %s2783_s23  ;;  %v1473_v2 = vld [vmem:[%s3927_s5 + $0x38] sm:$0xff]  ;;  %v1472_v55 = vld [vmem:[%s3927_s5 + $0x30] sm:$0xff] }
 0x18a   : > { %2618 = vrot.lane.b32.xlu1 %v3474_v13, %s2783_s23  ;;  %2613 = vrot.lane.b32.xlu0 %v3477_v30, %s2783_s23  ;;  %v1475_v13 = vld [vmem:[%s3927_s5 + $0x48] sm:$0xff]  ;;  %v1474_v30 = vld [vmem:[%s3927_s5 + $0x40] sm:$0xff] }
 0x18e   : > { %2628 = vrot.lane.b32.xlu1 %v3514_v26, %s2783_s23  ;;  %2623 = vrot.lane.b32.xlu0 %v3517_v27, %s2783_s23  ;;  %v1477_v26 = vld [vmem:[%s3927_s5 + $0x58] sm:$0xff]  ;;  %v1476_v27 = vld [vmem:[%s3927_s5 + $0x50] sm:$0xff] }
 0x192   : > { %2638 = vrot.lane.b32.xlu1 %v2557_v14, %s2783_s23  ;;  %2633 = vrot.lane.b32.xlu0 %v2552_v3, %s2783_s23  ;;  %v1480_v14 = vld [vmem:[%s3927_s5 + $0x70] sm:$0xff] }
 0x196   : > { %2648 = vrot.lane.b32.xlu1 %v2567_v7, %s2783_s23  ;;  %2643 = vrot.lane.b32.xlu0 %v2562_v48, %s2783_s23  ;;  %s2037_s23 = sshll.u32 %s3766_s17, 4  ;;  %s3811_s23 = int_to_ptr.vmem [resolvable:$true] %s2037_s23 }
 0x197   : > { %s2684_s9 = scalar_lea.vmem %s3811_s23, 2048  ;;  %p2691_p10 = scmp.lt.s32.totalorder %s3811_s23, %s2689_s28 }
 0x198   : > { %p2685_p5 = scmp.ne.s32.totalorder %s3811_s23, %s2684_s9 }
 0x19a   : > { %1489 = vperm.xlu1 %2451, %v1467_v25   ;;  %1484 = vperm.xlu0 %2450, %v1466_v28   ;;  %p2686_p6 = pnand %p2685_p5, %p2888_p8 }
 0x19c   : > { %p2687_p7 = pneg %p2686_p6 }
 0x19e   : > { %1499 = vperm.xlu1 %2451, %v1469_v0   ;;  %1494 = vperm.xlu0 %2450, %v1468_v39  }
 0x1a2   : > { %1509 = vperm.xlu1 %2451, %v1471_v11   ;;  %1504 = vperm.xlu0 %2450, %v1470_v10  }
 0x1a6   : > { %1519 = vperm.xlu1 %2451, %v1473_v2   ;;  %1514 = vperm.xlu0 %2450, %v1472_v55  }
 0x1aa   : > { %1529 = vperm.xlu1 %2451, %v1475_v13   ;;  %1524 = vperm.xlu0 %2450, %v1474_v30  }
 0x1ae   : > { %1539 = vperm.xlu1 %2451, %v1477_v26   ;;  %1534 = vperm.xlu0 %2450, %v1476_v27  }
 0x1b2   : > { %1549 = vperm.xlu1 %2451, %v1479_v51   ;;  %v2499_v54 = vpop.permute.xlu1 %2498  ;;  %1544 = vperm.xlu0 %2450, %v1478_v36   ;;  %v2494_v17 = vpop.permute.xlu0 %2493 }
 0x1b3   : > { %v2501_v18 = vunpack.i.h.bf16 %v2499_v54  ;;  %v2500_v6 = vunpack.i.l.bf16 %v2499_v54  ;;  %v2496_v4 = vunpack.i.h.bf16 %v2494_v17  ;;  %v2495_v61 = vunpack.i.l.bf16 %v2494_v17 }
 0x1b5   : > { %v1281_v3 = vsel %vm1280_vm3, %v2495_v61, %v2496_v4  ;;  %v1282_v58 = vsel %vm1280_vm3, %v2500_v6, %v2501_v18 }
 0x1b6   : > { %1559 = vperm.xlu1 %2451, %v1481_v37   ;;  %1554 = vperm.xlu0 %2450, %v1480_v14   ;;  %v1418_v45 = vpack.c.bf16 %v1282_v58, %v1281_v3 }
 0x1b8   : > { %v2509_v16 = vpop.permute.xlu1 %2508  ;;  %2260 = vmatprep.subr.bf16.mxu0 %v1418_v45  ;;  %v2504_v42 = vpop.permute.xlu0 %2503 }
 0x1b9   : > { %v2511_v12 = vunpack.i.h.bf16 %v2509_v16  ;;  %v2510_v40 = vunpack.i.l.bf16 %v2509_v16  ;;  %2261 = vmatpush3.bf16.msra.mxu0 %v1410_v56  ;;  %v2506_v59 = vunpack.i.h.bf16 %v2504_v42  ;;  %v2505_v33 = vunpack.i.l.bf16 %v2504_v42 }
 0x1bb   : > { %v1284_v8 = vsel %vm1280_vm3, %v2510_v40, %v2511_v12  ;;  %v1283_v41 = vsel %vm1280_vm3, %v2505_v33, %v2506_v59 }
 0x1bc   : > { %v1419_v53 = vpack.c.bf16 %v1284_v8, %v1283_v41 }
 0x1be   : > { %2262 = vmatprep.subr.bf16.mxu0 %v1419_v53 }
 0x1bf   : > { %2263 = vmatpush3.bf16.msra.mxu0 %v1411_v21 }
 0x1c0   : > { %v2519_v57 = vpop.permute.xlu1 %2518  ;;  %v2514_v63 = vpop.permute.xlu0 %2513 }
 0x1c1   : > { %v2521_v47 = vunpack.i.h.bf16 %v2519_v57  ;;  %v2520_v7 = vunpack.i.l.bf16 %v2519_v57  ;;  %v2516_v48 = vunpack.i.h.bf16 %v2514_v63  ;;  %v2515_v22 = vunpack.i.l.bf16 %v2514_v63 }
 0x1c3   : > { %v1285_v20 = vsel %vm1280_vm3, %v2515_v22, %v2516_v48  ;;  %v1286_v46 = vsel %vm1280_vm3, %v2520_v7, %v2521_v47  ;;  %v2655_v47 = vld [vmem:[%s3926_s4 + $0x1c] ss:$12 sps:$4 sm:$0xff]  }
 0x1c4   : > { %v1420_v56 = vpack.c.bf16 %v1286_v46, %v1285_v20 }
 0x1c6   : > { %2264 = vmatprep.subr.bf16.mxu0 %v1420_v56 }
 0x1c7   : > { %2265 = vmatpush3.bf16.msra.mxu0 %v1412_v29 }
 0x1c8   : > { %v2529_v25 = vpop.permute.xlu1 %2528  ;;  %v2524_v28 = vpop.permute.xlu0 %2523 }
 0x1c9   : > { %v2531_v49 = vunpack.i.h.bf16 %v2529_v25  ;;  %v2530_v24 = vunpack.i.l.bf16 %v2529_v25  ;;  %v2526_v21 = vunpack.i.h.bf16 %v2524_v28  ;;  %v2525_v0 = vunpack.i.l.bf16 %v2524_v28 }
 0x1cb   : > { %v1287_v39 = vsel %vm1280_vm3, %v2525_v0, %v2526_v21  ;;  %v1288_v11 = vsel %vm1280_vm3, %v2530_v24, %v2531_v49 }
 0x1cc   : > { %v1421_v10 = vpack.c.bf16 %v1288_v11, %v1287_v39  ;;  %v2657_v11 = vld [vmem:[%s3926_s4 + $0x18] ss:$12 sps:$4 sm:$0xff]  }
 0x1ce   : > { %2266 = vmatprep.subr.bf16.mxu0 %v1421_v10 }
 0x1cf   : > { %2267 = vmatpush3.bf16.msra.mxu0 %v1413_v1 }
 0x1d0   : > { %v2539_v2 = vpop.permute.xlu1 %2538  ;;  %v2534_v55 = vpop.permute.xlu0 %2533 }
 0x1d1   : > { %v2541_v5 = vunpack.i.h.bf16 %v2539_v2  ;;  %v2540_v52 = vunpack.i.l.bf16 %v2539_v2  ;;  %v2536_v29 = vunpack.i.h.bf16 %v2534_v55  ;;  %v2535_v13 = vunpack.i.l.bf16 %v2534_v55  ;;  %v2658_v55 = vld [vmem:[%s3926_s4 + $0x34] ss:$12 sps:$4 sm:$0xff]  }
 0x1d3   : > { %v1289_v30 = vsel %vm1280_vm3, %v2535_v13, %v2536_v29  ;;  %v1290_v26 = vsel %vm1280_vm3, %v2540_v52, %v2541_v5 }
 0x1d4   : > { %v1422_v27 = vpack.c.bf16 %v1290_v26, %v1289_v30 }
 0x1d6   : > { %2268 = vmatprep.subr.bf16.mxu0 %v1422_v27 }
 0x1d7   : > { %2269 = vmatpush3.bf16.msra.mxu0 %v1414_v35 }
 0x1d8   : > { %v2549_v51 = vpop.permute.xlu1 %2548  ;;  %v2544_v36 = vpop.permute.xlu0 %2543 }
 0x1d9   : > { %v2551_v19 = vunpack.i.h.bf16 %v2549_v51  ;;  %v2550_v34 = vunpack.i.l.bf16 %v2549_v51  ;;  %v2546_v1 = vunpack.i.h.bf16 %v2544_v36  ;;  %v2545_v54 = vunpack.i.l.bf16 %v2544_v36 }
 0x1db   : > { %v1291_v17 = vsel %vm1280_vm3, %v2545_v54, %v2546_v1  ;;  %v1292_v18 = vsel %vm1280_vm3, %v2550_v34, %v2551_v19 }
 0x1dc   : > { %v1423_v6 = vpack.c.bf16 %v1292_v18, %v1291_v17 }
 0x1de   : > { %2270 = vmatprep.subr.bf16.mxu0 %v1423_v6 }
 0x1df   : > { %2271 = vmatpush3.bf16.msra.mxu0 %v1415_v60 }
 0x1e0   : > { %v2559_v4 = vpop.permute.xlu1 %2558  ;;  %v2554_v61 = vpop.permute.xlu0 %2553 }
 0x1e1   : > { %v2561_v32 = vunpack.i.h.bf16 %v2559_v4  ;;  %v2560_v38 = vunpack.i.l.bf16 %v2559_v4  ;;  %v2556_v35 = vunpack.i.h.bf16 %v2554_v61  ;;  %v2555_v37 = vunpack.i.l.bf16 %v2554_v61  ;;  %v2660_v4 = vld [vmem:[%s3926_s4 + $0x30] ss:$12 sps:$4 sm:$0xff]  }
 0x1e3   : > { %v1293_v14 = vsel %vm1280_vm3, %v2555_v37, %v2556_v35  ;;  %v1294_v3 = vsel %vm1280_vm3, %v2560_v38, %v2561_v32  ;;  %v2661_v38 = vld [vmem:[%s3926_s4 + $0x4c] ss:$12 sps:$4 sm:$0xff]  }
 0x1e4   : > { %v1424_v58 = vpack.c.bf16 %v1294_v3, %v1293_v14 }
 0x1e6   : > { %2272 = vmatprep.subr.bf16.mxu0 %v1424_v58 }
 0x1e7   : > { %2273 = vmatpush3.bf16.msra.mxu0 %v1416_v31 }
 0x1e8   : > { %v2569_v45 = vpop.permute.xlu1 %2568  ;;  %v2564_v16 = vpop.permute.xlu0 %2563 }
 0x1e9   : > { %v2571_v44 = vunpack.i.h.bf16 %v2569_v45  ;;  %v2570_v43 = vunpack.i.l.bf16 %v2569_v45  ;;  %v2566_v60 = vunpack.i.h.bf16 %v2564_v16  ;;  %v2565_v12 = vunpack.i.l.bf16 %v2564_v16 }
 0x1eb   : > { %v1295_v40 = vsel %vm1280_vm3, %v2565_v12, %v2566_v60  ;;  %v1296_v42 = vsel %vm1280_vm3, %v2570_v43, %v2571_v44 }
 0x1ec   : > { %v2579_v59 = vpop.permute.xlu1 %2578  ;;  %v2574_v33 = vpop.permute.xlu0 %2573  ;;  %v1425_v8 = vpack.c.bf16 %v1296_v42, %v1295_v40 }
 0x1ed   : > { %v2581_v41 = vunpack.i.h.bf16 %v2579_v59  ;;  %v2580_v53 = vunpack.i.l.bf16 %v2579_v59  ;;  %v2576_v57 = vunpack.i.h.bf16 %v2574_v33  ;;  %v2575_v63 = vunpack.i.l.bf16 %v2574_v33 }
 0x1ee   : > { %2274 = vmatprep.subr.bf16.mxu0 %v1425_v8 }
 0x1ef   : > { %2275 = vmatpush3.bf16.msra.mxu0 %v1417_v15  ;;  %v1378_v23 = vsel %vm1377_vm8, %v2575_v63, %v2576_v57  ;;  %v1379_v31 = vsel %vm1377_vm8, %v2580_v53, %v2581_v41  ;;  %v2663_v41 = vld [vmem:[%s3926_s4 + $0x48] ss:$12 sps:$4 sm:$0xff]   ;;  %v2664_v63 = vld [vmem:[%s3926_s4 + $0x64] ss:$12 sps:$4 sm:$0xff]  }
 0x1f0   : > { %v2589_v7 = vpop.permute.xlu1 %2588  ;;  %v2584_v48 = vpop.permute.xlu0 %2583  ;;  %v1426_v22 = vpack.c.bf16 %v1379_v31, %v1378_v23 }
 0x1f1   : > { %v2591_v20 = vunpack.i.h.bf16 %v2589_v7  ;;  %v2590_v46 = vunpack.i.l.bf16 %v2589_v7  ;;  %v2586_v56 = vunpack.i.h.bf16 %v2584_v48  ;;  %v2585_v25 = vunpack.i.l.bf16 %v2584_v48 }
 0x1f2   : > { %1723 = vmatmul.mubr.bf16.vlgmr.msra.gmra.mrb[0].mxu0 %v2652_v62  ;;  %2340 = vmatprep.subr.bf16.mxu1 %v1426_v22 }
 0x1f3   : > { %2341 = vmatpush3.bf16.msra.mxu1 %v1426_v22  ;;  %v1380_v9 = vsel %vm1377_vm8, %v2585_v25, %v2586_v56  ;;  %v1381_v50 = vsel %vm1377_vm8, %v2590_v46, %v2591_v20  ;;  %1730 = vmatprep.mubr.bf16.mxu0 %v2655_v47  ;;  %v2667_v25 = vld [vmem:[%s3926_s4 + $0x60] ss:$12 sps:$4 sm:$0xff]  }
 0x1f4   : > { %v2599_v15 = vpop.permute.xlu1 %2598  ;;  %v2594_v28 = vpop.permute.xlu0 %2593  ;;  %v1427_v49 = vpack.c.bf16 %v1381_v50, %v1380_v9  ;;  %v2668_v9 = vld [vmem:[%s3926_s4 + $0x20] ss:$12 sps:$4 sm:$0xff]   ;;  %v2669_v50 = vld [vmem:[%s3926_s4 + $0x7c] ss:$12 sps:$4 sm:$0xff]  }
 0x1f5   : > { %v2601_v24 = vunpack.i.h.bf16 %v2599_v15  ;;  %v2600_v21 = vunpack.i.l.bf16 %v2599_v15  ;;  %v2596_v0 = vunpack.i.h.bf16 %v2594_v28  ;;  %v2595_v39 = vunpack.i.l.bf16 %v2594_v28  ;;  %v2671_v15 = vld [vmem:[%s3926_s4 + $0x38] ss:$12 sps:$4 sm:$0xff]  }
 0x1f6   : > { %2342 = vmatprep.subr.bf16.mxu1 %v1427_v49  ;;  %v2672_v28 = vld [vmem:[%s3926_s4 + $0x78] ss:$12 sps:$4 sm:$0xff]  }
 0x1f7   : > { %2343 = vmatpush3.bf16.msra.mxu1 %v1427_v49  ;;  %v1382_v10 = vsel %vm1377_vm8, %v2595_v39, %v2596_v0  ;;  %v1383_v2 = vsel %vm1377_vm8, %v2600_v21, %v2601_v24  ;;  %v2673_v49 = vld [vmem:[%s3926_s4 + $0x50] ss:$12 sps:$4 sm:$0xff]   ;;  %v2674_v24 = vld [vmem:[%s3926_s4 + $0x94] ss:$12 sps:$4 sm:$0xff]  }
 0x1f8   : > { %v2609_v5 = vpop.permute.xlu1 %2608  ;;  %v2604_v52 = vpop.permute.xlu0 %2603  ;;  %v1428_v29 = vpack.c.bf16 %v1383_v2, %v1382_v10  ;;  %v2676_v21 = vld [vmem:[%s3926_s4 + $0x68] ss:$12 sps:$4 sm:$0xff]   ;;  %v2677_v0 = vld [vmem:[%s3926_s4 + $0x90] ss:$12 sps:$4 sm:$0xff]   ;;  %v2678_v39 = vld [vmem:[%s3926_s4 + $0x80] ss:$12 sps:$4 sm:$0xff]  }
 0x1f9   : > { %v2611_v13 = vunpack.i.h.bf16 %v2609_v5  ;;  %v2610_v30 = vunpack.i.l.bf16 %v2609_v5  ;;  %v2606_v26 = vunpack.i.h.bf16 %v2604_v52  ;;  %v2605_v27 = vunpack.i.l.bf16 %v2604_v52  ;;  %v2681_v10 = vld [vmem:[%s3926_s4 + $0x98] ss:$12 sps:$4 sm:$0xff]   ;;  %v2682_v2 = vld [vmem:[%s3926_s4 + $0xa8] ss:$12 sps:$4 sm:$0xff]  }
 0x1fa   : > { %1731 = vmatmul.mubr.bf16.gmra.mrb[4].mxu0 %v2657_v11  ;;  %2344 = vmatprep.subr.bf16.mxu1 %v1428_v29  ;;  %v2679_v11 = vld [vmem:[%s3926_s4 + $0xac] ss:$12 sps:$4 sm:$0xff]  }
 0x1fb   : > { %2345 = vmatpush3.bf16.msra.mxu1 %v1428_v29  ;;  %v1384_v51 = vsel %vm1377_vm8, %v2605_v27, %v2606_v26  ;;  %v1385_v36 = vsel %vm1377_vm8, %v2610_v30, %v2611_v13  ;;  %1738 = vmatprep.mubr.bf16.mxu0 %v2658_v55  ;;  %v2683_v55 = vld [vmem:[%s3926_s4 + $0xb0] ss:$12 sps:$4 sm:$0xff]  }
 0x1fc   : > { %v2619_v19 = vpop.permute.xlu1 %2618  ;;  %v2614_v34 = vpop.permute.xlu0 %2613  ;;  %v1429_v1 = vpack.c.bf16 %v1385_v36, %v1384_v51 }
 0x1fd   : > { %v2621_v54 = vunpack.i.h.bf16 %v2619_v19  ;;  %v2620_v17 = vunpack.i.l.bf16 %v2619_v19  ;;  %v2616_v18 = vunpack.i.h.bf16 %v2614_v34  ;;  %v2615_v6 = vunpack.i.l.bf16 %v2614_v34 }
 0x1fe   : > { %2346 = vmatprep.subr.bf16.mxu1 %v1429_v1 }
 0x1ff   : > { %2347 = vmatpush3.bf16.msra.mxu1 %v1429_v1  ;;  %v1386_v61 = vsel %vm1377_vm8, %v2615_v6, %v2616_v18  ;;  %v1387_v32 = vsel %vm1377_vm8, %v2620_v17, %v2621_v54 }
 0x200   : > { %v2629_v35 = vpop.permute.xlu1 %2628  ;;  %v2624_v37 = vpop.permute.xlu0 %2623  ;;  %v1430_v14 = vpack.c.bf16 %v1387_v32, %v1386_v61 }
 0x201   : > { %v2631_v3 = vunpack.i.h.bf16 %v2629_v35  ;;  %v2630_v58 = vunpack.i.l.bf16 %v2629_v35  ;;  %v2626_v45 = vunpack.i.h.bf16 %v2624_v37  ;;  %v2625_v16 = vunpack.i.l.bf16 %v2624_v37 }
 0x202   : > { %1739 = vmatmul.mubr.bf16.gmra.mrb[8].mxu0 %v2660_v4  ;;  %2348 = vmatprep.subr.bf16.mxu1 %v1430_v14 }
 0x203   : > { %2349 = vmatpush3.bf16.msra.mxu1 %v1430_v14  ;;  %v1388_v44 = vsel %vm1377_vm8, %v2625_v16, %v2626_v45  ;;  %v1389_v43 = vsel %vm1377_vm8, %v2630_v58, %v2631_v3  ;;  %1746 = vmatprep.mubr.bf16.mxu0 %v2661_v38 }
 0x204   : > { %v2639_v60 = vpop.permute.xlu1 %2638  ;;  %v2634_v12 = vpop.permute.xlu0 %2633  ;;  %v1431_v40 = vpack.c.bf16 %v1389_v43, %v1388_v44 }
 0x205   : > { %v2641_v42 = vunpack.i.h.bf16 %v2639_v60  ;;  %v2640_v59 = vunpack.i.l.bf16 %v2639_v60  ;;  %v2636_v33 = vunpack.i.h.bf16 %v2634_v12  ;;  %v2635_v8 = vunpack.i.l.bf16 %v2634_v12 }
 0x206   : > { %2350 = vmatprep.subr.bf16.mxu1 %v1431_v40 }
 0x207   : > { %2351 = vmatpush3.bf16.msra.mxu1 %v1431_v40  ;;  %v1390_v53 = vsel %vm1377_vm8, %v2635_v8, %v2636_v33  ;;  %v1391_v57 = vsel %vm1377_vm8, %v2640_v59, %v2641_v42 }
 0x208   : > { %v2649_v62 = vpop.permute.xlu1 %2648  ;;  %v2644_v23 = vpop.permute.xlu0 %2643  ;;  %v1432_v31 = vpack.c.bf16 %v1391_v57, %v1390_v53 }
 0x209   : > { %v2651_v47 = vunpack.i.h.bf16 %v2649_v62  ;;  %v2650_v7 = vunpack.i.l.bf16 %v2649_v62  ;;  %v2646_v48 = vunpack.i.h.bf16 %v2644_v23  ;;  %v2645_v22 = vunpack.i.l.bf16 %v2644_v23 }
 0x20a   : > { %1747 = vmatmul.mubr.bf16.gmra.mrb[12].mxu0 %v2663_v41  ;;  %2352 = vmatprep.subr.bf16.mxu1 %v1432_v31 }
 0x20b   : > { %2353 = vmatpush3.bf16.msra.mxu1 %v1432_v31  ;;  %v1392_v20 = vsel %vm1377_vm8, %v2645_v22, %v2646_v48  ;;  %v1393_v46 = vsel %vm1377_vm8, %v2650_v7, %v2651_v47  ;;  %1754 = vmatprep.mubr.bf16.mxu0 %v2664_v63 }
 0x20c   : > { %v1433_v56 = vpack.c.bf16 %v1393_v46, %v1392_v20 }
 0x20e   : > { %2354 = vmatprep.subr.bf16.mxu1 %v1433_v56 }
 0x20f   : > { %2355 = vmatpush3.bf16.msra.mxu1 %v1433_v56 }
 0x212   : > { %1755 = vmatmul.mubr.bf16.gmra.mrb[16].mxu0 %v2667_v25  ;;  %2357 = vmatmul.mubr.bf16.vlgmr.msra.gmra.mrb[0].mxu1 %v2668_v9 }
 0x213   : > { %1762 = vmatprep.mubr.bf16.mxu0 %v2669_v50  ;;  %2360 = vmatprep.mubr.bf16.mxu1 %v2671_v15 }
 0x219   : > { %v1485_v27 = vpop.permute.xlu0 %1484  ;;  %v1490_v54 = vpop.permute.xlu1 %1489 }
 0x21a   : > { %1763 = vmatmul.mubr.bf16.gmra.mrb[20].mxu0 %v2672_v28  ;;  %2361 = vmatmul.mubr.bf16.gmra.mrb[4].mxu1 %v2673_v49 }
 0x21b   : > { %1770 = vmatprep.mubr.bf16.mxu0 %v2674_v24  ;;  %2364 = vmatprep.mubr.bf16.mxu1 %v2676_v21 }
 0x21d   : > { %v1495_v18 = vpop.permute.xlu0 %1494  ;;  %v1500_v61 = vpop.permute.xlu1 %1499 }
 0x221   : > { %v1505_v35 = vpop.permute.xlu0 %1504  ;;  %v1510_v3 = vpop.permute.xlu1 %1509 }
 0x222   : > { %1771 = vmatmul.mubr.bf16.gmra.mrb[24].mxu0 %v2677_v0  ;;  %2365 = vmatmul.mubr.bf16.gmra.mrb[8].mxu1 %v2678_v39 }
 0x223   : > { %1778 = vmatprep.mubr.bf16.mxu0 %v2679_v11  ;;  %2368 = vmatprep.mubr.bf16.mxu1 %v2681_v10 }
 0x225   : > { %v1515_v45 = vpop.permute.xlu0 %1514  ;;  %v1520_v40 = vpop.permute.xlu1 %1519 }
 0x229   : > { %v3763_v42 = vpop.permute.xlu0 %1524  ;;  %v1530_v50 = vpop.permute.xlu1 %1529 }
 0x22a   : > { %1779 = vmatmul.mubr.bf16.gmra.mrb[28].mxu0 %v2682_v2  ;;  %2369 = vmatmul.mubr.bf16.gmra.mrb[12].mxu1 %v2683_v55 }
 0x22d   : > { %v1535_v15 = vpop.permute.xlu0 %1534 }
 0x2c5   : > { %v2276_v5 = vpop.f32.mrb[0].mxu0 }
 0x2c6   : > { %v2277_v52 = vpop.f32.mrb[1].mxu0 }
 0x2c7   : > { %v2278_v29 = vadd.f32 %v2277_v52, %v2276_v5  ;;  %v2279_v13 = vpop.f32.mrb[2].mxu0 }
 0x2c8   : > { %v2280_v30 = vpop.f32.mrb[3].mxu0 }
 0x2c9   : > { %v2281_v26 = vadd.f32 %v2280_v30, %v2279_v13  ;;  %v1725_v41 = vadd.f32 %v2278_v29, %v1485_v27 }
 0x2cb   : > { %v1728_v48 = vadd.f32 %v2281_v26, %v1490_v54 }
 0x2cd   : > { %v2282_v51 = vpop.f32.mrb[4].mxu0 }
 0x2ce   : > { %v2283_v36 = vpop.f32.mrb[5].mxu0 }
 0x2cf   : > { %v2284_v19 = vadd.f32 %v2283_v36, %v2282_v51  ;;  %v2285_v34 = vpop.f32.mrb[6].mxu0 }
 0x2d0   : > { %v2286_v1 = vpop.f32.mrb[7].mxu0 }
 0x2d1   : > { %v2287_v17 = vadd.f32 %v2286_v1, %v2285_v34  ;;  %v1733_v59 = vadd.f32 %v2284_v19, %v1495_v18  ;;  %v1540_v34 = vpop.permute.xlu1 %1539  ;;  %v1545_v1 = vpop.permute.xlu0 %1544 }
 0x2d3   : > { %v1736_v62 = vadd.f32 %v2287_v17, %v1500_v61 }
 0x2d5   : > { %v2288_v6 = vpop.f32.mrb[8].mxu0 }
 0x2d6   : > { %v2289_v4 = vpop.f32.mrb[9].mxu0 }
 0x2d7   : > { %v2290_v32 = vadd.f32 %v2289_v4, %v2288_v6  ;;  %v2291_v38 = vpop.f32.mrb[10].mxu0 }
 0x2d8   : > { %v2292_v37 = vpop.f32.mrb[11].mxu0 }
 0x2d9   : > { %v2293_v14 = vadd.f32 %v2292_v37, %v2291_v38  ;;  %v1741_v21 = vadd.f32 %v2290_v32, %v1505_v35 }
 0x2db   : > { %v1744_v13 = vadd.f32 %v2293_v14, %v1510_v3 }
 0x2dd   : > { %v2294_v58 = vpop.f32.mrb[12].mxu0 }
 0x2de   : > { %v2295_v16 = vpop.f32.mrb[13].mxu0 }
 0x2df   : > { %v2296_v44 = vadd.f32 %v2295_v16, %v2294_v58  ;;  %v2297_v43 = vpop.f32.mrb[14].mxu0 }
 0x2e0   : > { %v2298_v60 = vpop.f32.mrb[15].mxu0 }
 0x2e1   : > { %v2299_v12 = vadd.f32 %v2298_v60, %v2297_v43  ;;  %v1749_v28 = vadd.f32 %v2296_v44, %v1515_v45 }
 0x2e3   : > { %v1752_v2 = vadd.f32 %v2299_v12, %v1520_v40 }
 0x2e5   : > { %v2300_v33 = vpop.f32.mrb[16].mxu0  ;;  %v2358_v8 = vpop.f32.mrb[0].mxu1 }
 0x2e6   : > { %v1830_v53 = vadd.f32 %v2358_v8, %v1733_v59  ;;  %v2301_v57 = vpop.f32.mrb[17].mxu0  ;;  %v1821_v63 = vpop.f32.mrb[1].mxu1 }
 0x2e7   : > { %v2302_v23 = vadd.f32 %v2301_v57, %v2300_v33  ;;  %v1822_v31 = vadd.f32 %v1821_v63, %v1725_v41  ;;  %v2303_v47 = vpop.f32.mrb[18].mxu0  ;;  %v2359_v7 = vpop.f32.mrb[2].mxu1 }
 0x2e8   : > { %1886 = vst [vmem:[%s3766_s17 + $0x10] sm:$0xff] %v1830_v53  ;;  %v1833_v22 = vadd.f32 %v2359_v7, %v1736_v62  ;;  %v2304_v20 = vpop.f32.mrb[19].mxu0  ;;  %v1824_v46 = vpop.f32.mrb[3].mxu1  ;;  %v1934_v19 = vmul.f32 %v1830_v53, %v1830_v53 }
 0x2e9   : > { %1884 = vst [vmem:[%s3766_s17] sm:$0xff] %v1822_v31  ;;  %v2305_v56 = vadd.f32 %v2304_v20, %v2303_v47  ;;  %v1825_v25 = vadd.f32 %v1824_v46, %v1728_v48  ;;  %1900 = vadd.xlane.f32.xlu0 %v1822_v31  ;;  %v1932_v0 = vmul.f32 %v1822_v31, %v1822_v31  ;;  %v1555_v59 = vpop.permute.xlu0 %1554 }
 0x2ea   : > { %1887 = vst [vmem:[%s3766_s17 + $0x18] sm:$0xff] %v1833_v22  ;;  %v1757_v6 = vadd.f32 %v2302_v23, %v3763_v42  ;;  %v1935_v45 = vmul.f32 %v1833_v22, %v1833_v22  ;;  %v1550_v42 = vpop.permute.xlu1 %1549 }
 0x2eb   : > { %1885 = vst [vmem:[%s3766_s17 + $0x8] sm:$0xff] %v1825_v25  ;;  %1902 = vadd.xlane.f32.xlu1 %v1825_v25  ;;  %v1933_v9 = vmul.f32 %v1825_v25, %v1825_v25  ;;  %v1760_v58 = vadd.f32 %v2305_v56, %v1530_v50 }
 0x2ed   : > { %v2306_v49 = vpop.f32.mrb[20].mxu0  ;;  %v2362_v24 = vpop.f32.mrb[4].mxu1  ;;  %1950 = vadd.xlane.f32.xlu0 %v1933_v9 }
 0x2ee   : > { %v3772_v39 = vadd.f32 %v2362_v24, %v1749_v28  ;;  %v2307_v11 = vpop.f32.mrb[21].mxu0  ;;  %v1837_v10 = vpop.f32.mrb[5].mxu1 }
 0x2ef   : > { %v2308_v55 = vadd.f32 %v2307_v11, %v2306_v49  ;;  %v1838_v5 = vadd.f32 %v1837_v10, %v1741_v21  ;;  %v2309_v52 = vpop.f32.mrb[22].mxu0  ;;  %v2363_v29 = vpop.f32.mrb[6].mxu1  ;;  %1948 = vadd.xlane.f32.xlu1 %v1932_v0 }
 0x2f0   : > { %1890 = vst [vmem:[%s3766_s17 + $0x30] sm:$0xff] %v3772_v39  ;;  %v3776_v30 = vadd.f32 %v2363_v29, %v1752_v2  ;;  %v2310_v26 = vpop.f32.mrb[23].mxu0  ;;  %v1840_v27 = vpop.f32.mrb[7].mxu1  ;;  %v1938_v25 = vmul.f32 %v3772_v39, %v3772_v39 }
 0x2f1   : > { %1888 = vst [vmem:[%s3766_s17 + $0x20] sm:$0xff] %v1838_v5  ;;  %v2311_v51 = vadd.f32 %v2310_v26, %v2309_v52  ;;  %v1841_v36 = vadd.f32 %v1840_v27, %v1744_v13  ;;  %1904 = vadd.xlane.f32.xlu0 %v1830_v53  ;;  %v1765_v54 = vadd.f32 %v2308_v55, %v1535_v15  ;;  %v1560_v9 = vpop.permute.xlu1 %1559 }
 0x2f2   : > { %1891 = vst [vmem:[%s3766_s17 + $0x38] sm:$0xff] %v3776_v30  ;;  %v1936_v40 = vmul.f32 %v1838_v5, %v1838_v5  ;;  %v1939_v49 = vmul.f32 %v3776_v30, %v3776_v30 }
 0x2f3   : > { %1889 = vst [vmem:[%s3766_s17 + $0x28] sm:$0xff] %v1841_v36  ;;  %1952 = vadd.xlane.f32.xlu1 %v1934_v19  ;;  %v1768_v38 = vadd.f32 %v2311_v51, %v1540_v34  ;;  %v1937_v7 = vmul.f32 %v1841_v36, %v1841_v36 }
 0x2f5   : > { %v2312_v17 = vpop.f32.mrb[24].mxu0  ;;  %v2366_v18 = vpop.f32.mrb[8].mxu1  ;;  %1906 = vadd.xlane.f32.xlu0 %v1833_v22 }
 0x2f6   : > { %v3783_v4 = vadd.f32 %v2366_v18, %v1765_v54  ;;  %v2313_v61 = vpop.f32.mrb[25].mxu0  ;;  %v1853_v32 = vpop.f32.mrb[9].mxu1 }
 0x2f7   : > { %v2314_v35 = vadd.f32 %v2313_v61, %v2312_v17  ;;  %v1854_v37 = vadd.f32 %v1853_v32, %v1757_v6  ;;  %v2315_v14 = vpop.f32.mrb[26].mxu0  ;;  %v2367_v3 = vpop.f32.mrb[10].mxu1  ;;  %1908 = vadd.xlane.f32.xlu1 %v1838_v5 }
 0x2f8   : > { %1894 = vst [vmem:[%s3766_s17 + $0x50] sm:$0xff] %v3783_v4  ;;  %v1865_v16 = vadd.f32 %v2367_v3, %v1768_v38  ;;  %v2316_v44 = vpop.f32.mrb[27].mxu0  ;;  %v1856_v43 = vpop.f32.mrb[11].mxu1  ;;  %v1942_v0 = vmul.f32 %v3783_v4, %v3783_v4 }
 0x2f9   : > { %1892 = vst [vmem:[%s3766_s17 + $0x40] sm:$0xff] %v1854_v37  ;;  %v2317_v60 = vadd.f32 %v2316_v44, %v2315_v14  ;;  %v1857_v12 = vadd.f32 %v1856_v43, %v1760_v58  ;;  %1954 = vadd.xlane.f32.xlu0 %v1935_v45  ;;  %v1773_v41 = vadd.f32 %v2314_v35, %v1545_v1 }
 0x2fa   : > { %1895 = vst [vmem:[%s3766_s17 + $0x58] sm:$0xff] %v1865_v16  ;;  %v1940_v24 = vmul.f32 %v1854_v37, %v1854_v37 }
 0x2fb   : > { %1893 = vst [vmem:[%s3766_s17 + $0x48] sm:$0xff] %v1857_v12  ;;  %1956 = vadd.xlane.f32.xlu1 %v1936_v40  ;;  %v1776_v47 = vadd.f32 %v2317_v60, %v1550_v42  ;;  %v1941_v21 = vmul.f32 %v1857_v12, %v1857_v12 }
 0x2fd   : > { %v2318_v33 = vpop.f32.mrb[28].mxu0  ;;  %v2370_v8 = vpop.f32.mrb[12].mxu1  ;;  %1910 = vadd.xlane.f32.xlu0 %v1841_v36 }
 0x2fe   : > { %v2319_v53 = vpop.f32.mrb[29].mxu0  ;;  %v1869_v57 = vpop.f32.mrb[13].mxu1 }
 0x2ff   : > { %v2320_v63 = vadd.f32 %v2319_v53, %v2318_v33  ;;  %v1870_v62 = vadd.f32 %v1869_v57, %v1773_v41  ;;  %v2321_v23 = vpop.f32.mrb[30].mxu0  ;;  %v2371_v31 = vpop.f32.mrb[14].mxu1  ;;  %1912 = vadd.xlane.f32.xlu1 %v3772_v39  ;;  %v1943_v39 = vmul.f32 %v1865_v16, %v1865_v16 }
 0x300   : > { %v2322_v48 = vpop.f32.mrb[31].mxu0  ;;  %v1872_v22 = vpop.f32.mrb[15].mxu1 }
 0x301   : > { %v1781_v20 = vadd.f32 %v2320_v63, %v1555_v59  ;;  %1896 = vst [vmem:[%s3766_s17 + $0x60] sm:$0xff] %v1870_v62  ;;  %v2323_v46 = vadd.f32 %v2322_v48, %v2321_v23  ;;  %v1873_v56 = vadd.f32 %v1872_v22, %v1776_v47  ;;  %1958 = vadd.xlane.f32.xlu0 %v1937_v7 }
 0x302   : > { %v1944_v11 = vmul.f32 %v1870_v62, %v1870_v62 }
 0x303   : > { %v1784_v50 = vadd.f32 %v2323_v46, %v1560_v9  ;;  %1897 = vst [vmem:[%s3766_s17 + $0x68] sm:$0xff] %v1873_v56  ;;  %1960 = vadd.xlane.f32.xlu1 %v1938_v25  ;;  %v1878_v15 = vadd.f32 %v2370_v8, %v1781_v20  ;;  %v1945_v10 = vmul.f32 %v1873_v56, %v1873_v56 }
 0x305   : > { %1914 = vadd.xlane.f32.xlu0 %v3776_v30  ;;  %1898 = vst [vmem:[%s3766_s17 + $0x70] sm:$0xff] %v1878_v15  ;;  %v1881_v28 = vadd.f32 %v2371_v31, %v1784_v50  ;;  %v1946_v2 = vmul.f32 %v1878_v15, %v1878_v15 }
 0x307   : > { %1916 = vadd.xlane.f32.xlu1 %v1854_v37  ;;  %1899 = vst [vmem:[%s3766_s17 + $0x78] sm:$0xff] %v1881_v28  ;;  %v1947_v55 = vmul.f32 %v1881_v28, %v1881_v28  ;;  %s2690_s17 = scalar_lea.vmem %s2689_s28, 4096 }
 0x308   : > { %p2692_p11 = scmp.lt.s32.totalorder %s2690_s17, %s2684_s9 }
 0x309   : > { %1962 = vadd.xlane.f32.xlu0 %v1939_v49 }
 0x30a   : > { %p2693_p12 = por %p2692_p11, %p2691_p10 }
 0x30b   : > { %1964 = vadd.xlane.f32.xlu1 %v1940_v24 }
 0x30c   : > { %p2694_p13 = pnand %p2693_p12, %p2687_p7 }
 0x30d   : > { %1918 = vadd.xlane.f32.xlu0 %v1857_v12 }
 0x30f   : > { %1920 = vadd.xlane.f32.xlu1 %v3783_v4 }
 0x311   : > { %1966 = vadd.xlane.f32.xlu0 %v1941_v21 }
 0x313   : > { %1968 = vadd.xlane.f32.xlu1 %v1942_v0 }
 0x315   : > { %1922 = vadd.xlane.f32.xlu0 %v1865_v16 }
 0x317   : > { %1924 = vadd.xlane.f32.xlu1 %v1870_v62 }
 0x319   : > { %1970 = vadd.xlane.f32.xlu0 %v1943_v39 }
 0x31b   : > { %1972 = vadd.xlane.f32.xlu1 %v1944_v11 }
 0x31d   : > { %1926 = vadd.xlane.f32.xlu0 %v1873_v56 }
 0x31f   : > { %1928 = vadd.xlane.f32.xlu1 %v1878_v15 }
 0x321   : > { %1974 = vadd.xlane.f32.xlu0 %v1945_v10 }
 0x323   : > { %1976 = vadd.xlane.f32.xlu1 %v1946_v2 }
 0x325   : > { %1930 = vadd.xlane.f32.xlu0 %v1881_v28 }
 0x329   : > { %1978 = vadd.xlane.f32.xlu0 %v1947_v55 }
 0x32a   : > { %2697 = shalt.err (!%p2694_p13)
}
 0x32b   : > { %s2698_s10 = scalar_lea.hbm %s3809_s22, 2048  ;;  %s2702_s14 = scalar_lea.hbm %s3928_s6, 8192 }
 0x32c   : > { %p2699_p0 = scmp.ne.s32.totalorder %s3809_s22, %s2698_s10  ;;  %p2703_p3 = scmp.lt.u32.totalorder %s3809_s22, %s3928_s6 }
 0x32d   : > { %p2704_p4 = scmp.lt.u32.totalorder %s2702_s14, %s2698_s10  ;;  %p2706_p6 = scmp.lt.u32.totalorder %s2698_s10, %s3809_s22 }
 0x32e   : > { %p2700_p1 = pnand %p2699_p0, %p2888_p8 }
 0x32f   : > { %p2705_p5 = por %p2704_p4, %p2703_p3 }
 0x330   : > { %p2701_p2 = pneg %p2700_p1 }
 0x331   : > { %p2707_p7 = por %p2706_p6, %p2705_p5 }
 0x333   : > { %p2708_p10 = pnand %p2707_p7, %p2701_p2 }
 0x335   : > { %2711 = shalt.err (!%p2708_p10)
}
 0x336   : > { %s2785_s9 = smov 128   ;;  %s2786_s27 = smov 256   ;;  %vm1996_vm7 = vcmask 15360  }
 0x337   : > { %s2787_s28 = smov 8   ;;  %s3956_s17 = sshll.u32 %s3082_s19, 3 }
 0x338   : > { %2372 = dma.vmem_to_hbm [thread:$0]  (%p2888_p8), %s3811_s23, 2048, %s3809_s22, %s3815_s21, %s2785_s9, %s2786_s27, %s2787_s28  }
 0x339   : > { %s3844_s10 = scalar_lea.vmem %s3929_s7, %s3956_s17 }
 0x376   : > { %v1901_v5 = vpop.xlane.xlu0 %1900 }
 0x378   : > { %v1903_v52 = vpop.xlane.xlu1 %1902 }
 0x37a   : > { %v1951_v29 = vpop.xlane.xlu0 %1950 }
 0x37b   : > { %v1981_v13 = vsel %vm1151_vm9, %v1903_v52, %v1951_v29 }
 0x37c   : > { %1998 = vst.msk [vmem:[%s3844_s10 + $0x8] sm:$0xff] %vm1996_vm7, %v1981_v13  ;;  %v1949_v30 = vpop.xlane.xlu1 %1948 }
 0x37d   : > { %v1980_v26 = vsel %vm1151_vm9, %v1901_v5, %v1949_v30 }
 0x37e   : > { %1997 = vst.msk [vmem:[%s3844_s10] sm:$0xff] %vm1996_vm7, %v1980_v26  ;;  %v1905_v27 = vpop.xlane.xlu0 %1904 }
 0x380   : > { %v1953_v51 = vpop.xlane.xlu1 %1952 }
 0x381   : > { %v1982_v36 = vsel %vm1151_vm9, %v1905_v27, %v1953_v51 }
 0x382   : > { %1999 = vst.msk [vmem:[%s3844_s10 + $0x10] sm:$0xff] %vm1996_vm7, %v1982_v36  ;;  %v1907_v19 = vpop.xlane.xlu0 %1906 }
 0x384   : > { %v1909_v34 = vpop.xlane.xlu1 %1908 }
 0x386   : > { %v1955_v1 = vpop.xlane.xlu0 %1954 }
 0x387   : > { %v1983_v54 = vsel %vm1151_vm9, %v1907_v19, %v1955_v1 }
 0x388   : > { %2000 = vst.msk [vmem:[%s3844_s10 + $0x18] sm:$0xff] %vm1996_vm7, %v1983_v54  ;;  %v1957_v17 = vpop.xlane.xlu1 %1956 }
 0x389   : > { %v1984_v18 = vsel %vm1151_vm9, %v1909_v34, %v1957_v17 }
 0x38a   : > { %2001 = vst.msk [vmem:[%s3844_s10 + $0x20] sm:$0xff] %vm1996_vm7, %v1984_v18  ;;  %v1911_v6 = vpop.xlane.xlu0 %1910 }
 0x38c   : > { %v1913_v4 = vpop.xlane.xlu1 %1912 }
 0x38e   : > { %v1959_v61 = vpop.xlane.xlu0 %1958 }
 0x38f   : > { %v1985_v32 = vsel %vm1151_vm9, %v1911_v6, %v1959_v61 }
 0x390   : > { %2002 = vst.msk [vmem:[%s3844_s10 + $0x28] sm:$0xff] %vm1996_vm7, %v1985_v32  ;;  %v1961_v38 = vpop.xlane.xlu1 %1960 }
 0x391   : > { %v1986_v35 = vsel %vm1151_vm9, %v1913_v4, %v1961_v38 }
 0x392   : > { %2003 = vst.msk [vmem:[%s3844_s10 + $0x30] sm:$0xff] %vm1996_vm7, %v1986_v35  ;;  %v1915_v37 = vpop.xlane.xlu0 %1914 }
 0x394   : > { %v1917_v14 = vpop.xlane.xlu1 %1916 }
 0x396   : > { %v1963_v3 = vpop.xlane.xlu0 %1962 }
 0x397   : > { %v1987_v58 = vsel %vm1151_vm9, %v1915_v37, %v1963_v3 }
 0x398   : > { %2004 = vst.msk [vmem:[%s3844_s10 + $0x38] sm:$0xff] %vm1996_vm7, %v1987_v58  ;;  %v1965_v45 = vpop.xlane.xlu1 %1964 }
 0x399   : > { %v1988_v16 = vsel %vm1151_vm9, %v1917_v14, %v1965_v45 }
 0x39a   : > { %2005 = vst.msk [vmem:[%s3844_s10 + $0x40] sm:$0xff] %vm1996_vm7, %v1988_v16  ;;  %v1919_v44 = vpop.xlane.xlu0 %1918 }
 0x39c   : > { %v1921_v43 = vpop.xlane.xlu1 %1920 }
 0x39e   : > { %v1967_v60 = vpop.xlane.xlu0 %1966 }
 0x39f   : > { %v1989_v12 = vsel %vm1151_vm9, %v1919_v44, %v1967_v60 }
 0x3a0   : > { %2006 = vst.msk [vmem:[%s3844_s10 + $0x48] sm:$0xff] %vm1996_vm7, %v1989_v12  ;;  %v1969_v40 = vpop.xlane.xlu1 %1968 }
 0x3a1   : > { %v1990_v42 = vsel %vm1151_vm9, %v1921_v43, %v1969_v40 }
 0x3a2   : > { %2007 = vst.msk [vmem:[%s3844_s10 + $0x50] sm:$0xff] %vm1996_vm7, %v1990_v42  ;;  %v1923_v59 = vpop.xlane.xlu0 %1922 }
 0x3a4   : > { %v1925_v33 = vpop.xlane.xlu1 %1924 }
 0x3a6   : > { %v1971_v8 = vpop.xlane.xlu0 %1970 }
 0x3a7   : > { %v1991_v41 = vsel %vm1151_vm9, %v1923_v59, %v1971_v8 }
 0x3a8   : > { %2008 = vst.msk [vmem:[%s3844_s10 + $0x58] sm:$0xff] %vm1996_vm7, %v1991_v41  ;;  %v1973_v53 = vpop.xlane.xlu1 %1972 }
 0x3a9   : > { %v1992_v57 = vsel %vm1151_vm9, %v1925_v33, %v1973_v53 }
 0x3aa   : > { %2009 = vst.msk [vmem:[%s3844_s10 + $0x60] sm:$0xff] %vm1996_vm7, %v1992_v57  ;;  %v1927_v63 = vpop.xlane.xlu0 %1926 }
 0x3ac   : > { %v1929_v62 = vpop.xlane.xlu1 %1928 }
 0x3ae   : > { %v1975_v23 = vpop.xlane.xlu0 %1974 }
 0x3af   : > { %v1993_v31 = vsel %vm1151_vm9, %v1927_v63, %v1975_v23 }
 0x3b0   : > { %2010 = vst.msk [vmem:[%s3844_s10 + $0x68] sm:$0xff] %vm1996_vm7, %v1993_v31  ;;  %v1977_v47 = vpop.xlane.xlu1 %1976 }
 0x3b1   : > { %v1994_v7 = vsel %vm1151_vm9, %v1929_v62, %v1977_v47 }
 0x3b2   : > { %2011 = vst.msk [vmem:[%s3844_s10 + $0x70] sm:$0xff] %vm1996_vm7, %v1994_v7  ;;  %v1931_v48 = vpop.xlane.xlu0 %1930 }
 0x3b6   : > { %v1979_v22 = vpop.xlane.xlu0 %1978 }
 0x3b7   : > { %v1995_v20 = vsel %vm1151_vm9, %v1931_v48, %v1979_v22 }
 0x3b8   : > { %2012 = vst.msk [vmem:[%s3844_s10 + $0x78] sm:$0xff] %vm1996_vm7, %v1995_v20 }
 0x3b9 PF: > { %p2378_p8 = scmp.ge.s32.totalorder %s2778_s8, 2  ;;  %s2055_s15 = sand.u32 1, %s2750_s24  }
 0x3ba   : > { %s2056_s19 = scalar_lea.sflag [#allocation4], %s2055_s15 }
 0x3bb   : > { %p2375_p11 = pnand %p2378_p8, %p2892_p9 }
 0x3bd   : > { %2745 = dma.done.wait (!%p2375_p11), %s2056_s19, 2048  }
 0x3be   : > { %2747 = vsyncadd (!%p2375_p11), %s2056_s19, 4294965248  ;;  %s21_s8 = sadd.s32 1, %s2778_s8   ;;  %s3957_s23 = sld [smem:[#allocation6_spill]] }
 0x3bf   : > { %p18_p12 = scmp.ge.s32.totalorder %s21_s8, 6   ;;  %s3958_s24 = smov %s2754_s25 }
 0x3c0   : > { %s3959_s25 = smov %s2758_s26  ;;  %s3960_s26 = smov %s2900_s20 }
 0x3c1   : > { %s3961_s27 = smov %s2770_s29  ;;  %s3962_s28 = smov %s2774_s30 }
 0x3c2   : > { %s3963_s29 = smov %s3966_s11  ;;  %20 = sbr.rel (!%p18_p12) target bundleno = 7 (0x7), region = 143 }
 0x3c4   : > { %s3964_s30 = smov %s3957_s23 }
 0x3c9   :  { %2073 = vsyncpa [#allocation4], 1 }
 0x3ca   :  { %2075 = vsyncpa [#allocation4 + $0x1], 1 }

</bundles_post_ra>
